<compile_context>
chip_gen: v6e
topology: v6e:2x2x1
jax: 0.10.0
libtpu: 0.0.40
codegen_flags: <defaults>
</compile_context>

<pallas_src>
import jax
import jax.numpy as jnp
from jax.experimental import pallas as pl
from jax.experimental.pallas import tpu as pltpu


def _fused_linear_add_kernel(x_ref, w_ref, b_ref, r_ref, o_ref):
    # In-kernel bf16 cast -> single-pass MXU matmul; f32 accumulation.
    acc = jnp.dot(
        x_ref[...].astype(jnp.bfloat16),
        w_ref[...].astype(jnp.bfloat16),
        preferred_element_type=jnp.float32,
    )
    # TODO(synk): Dropout(p=0.1) is identity in eval/inference mode; a
    # training-mode variant would need pltpu.prng_seed/prng_random_bits
    # masking with 1/(1-p) scaling inside the kernel.
    o_ref[...] = (
        acc + b_ref[...].astype(jnp.float32) + r_ref[...].astype(jnp.float32)
    ).astype(o_ref.dtype)


def _round_up(v, m):
    return ((v + m - 1) // m) * m


def fused_linear_dropout_add(x, w, b, residual, *, tm=None):
    """x: [M, K], w: [K, N], b: [N], residual: [M, N] -> [M, N] (residual dtype).

    x / w may be f32 or bf16; no dtype cast is done in the wrapper (the kernel
    casts tiles to bf16 on the fly, accumulating in f32).
    """
    M, K = x.shape
    Kw, N = w.shape
    assert K == Kw and residual.shape == (M, N) and b.shape == (N,)

    if tm is None:
        # Split rows into 2 balanced, sublane-aligned blocks so v7x's two
        # TensorCores both get work; near-neutral on single-TC v5e/v6e for a
        # ~3 MiB problem. (On v5e, tm=M / grid=1 is a small further win.)
        tm = _round_up(pl.cdiv(M, 2), 8)
    tm = min(tm, _round_up(M, 8))

    grid = (pl.cdiv(M, tm),)
    b2 = b.reshape(1, N)
    out_dtype = residual.dtype

    itemsize = jnp.dtype(x.dtype).itemsize
    r_itemsize = jnp.dtype(residual.dtype).itemsize
    o_itemsize = jnp.dtype(out_dtype).itemsize
    cost = pl.CostEstimate(
        flops=2 * M * K * N,
        transcendentals=0,
        bytes_accessed=(
            M * K * itemsize          # x
            + K * N * itemsize        # w
            + N * itemsize            # b
            + M * N * r_itemsize      # residual
            + M * N * o_itemsize      # out
        ),
    )

    return pl.pallas_call(
        _fused_linear_add_kernel,
        out_shape=jax.ShapeDtypeStruct((M, N), out_dtype),
        grid=grid,
        in_specs=[
            pl.BlockSpec((tm, K), lambda i: (i, 0)),   # x row-block, full K
            pl.BlockSpec((K, N), lambda i: (0, 0)),    # weight, resident
            pl.BlockSpec((1, N), lambda i: (0, 0)),    # bias, resident
            pl.BlockSpec((tm, N), lambda i: (i, 0)),   # residual row-block
        ],
        out_specs=pl.BlockSpec((tm, N), lambda i: (i, 0)),
        compiler_params=pltpu.CompilerParams(
            dimension_semantics=("parallel",),
        ),
        cost_estimate=cost,
    )(x, w, b2, residual)


class MPallas:
    """Mirrors PyTorch module M: Linear(1024->256) + Dropout(eval) + residual add."""

    def __init__(self, key, in_features=1024, out_features=256, dtype=jnp.float32):
        k_w, k_b = jax.random.split(key)
        # Deterministic init analogous to nn.Linear's uniform(-1/sqrt(fan_in), ...).
        bound = 1.0 / jnp.sqrt(in_features)
        # Stored already transposed to [K, N] for the kernel.
        self.w = jax.random.uniform(
            k_w, (in_features, out_features), dtype, minval=-bound, maxval=bound
        )
        self.b = jax.random.uniform(
            k_b, (out_features,), dtype, minval=-bound, maxval=bound
        )

    def __call__(self, x277, x275):
        # x277: [1, M, 1024], x275: [1, M, 256]
        B, M, K = x277.shape
        _, _, N = x275.shape
        out = fused_linear_dropout_add(
            x277.reshape(M, K), self.w, self.b, x275.reshape(M, N)
        )
        return out.reshape(B, M, N)


if __name__ == "__main__":
    key = jax.random.PRNGKey(0)
    k_x277, k_x275, k_params = jax.random.split(key, 3)

    # Shapes consistent with the module's forward.
    x277 = jax.random.normal(k_x277, (1, 384, 1024), jnp.float32)
    x275 = jax.random.normal(k_x275, (1, 384, 256), jnp.float32)

    model = MPallas(k_params)
    out = model(x277, x275)
    out = jax.block_until_ready(out)

    # Reference in full-precision f32 (dropout is identity in eval mode).
    # Kernel uses a bf16 MXU pass with f32 accumulation, so allow bf16-class
    # tolerance (K=1024 contraction -> ~0.5% relative error at most).
    ref = (
        jnp.einsum(
            "bmk,kn->bmn", x277, model.w, precision=jax.lax.Precision.HIGHEST
        )
        + model.b
        + x275
    )
    assert out.shape == (1, 384, 256)
    assert jnp.allclose(out, ref, atol=5e-2, rtol=5e-2)

    print("KERNEL_OK")
</pallas_src>

<mosaic_0001>
module attributes {stable_mosaic.version = 11 : i64} {
  func.func @_fused_linear_add_kernel(%arg0: i32, %arg1: memref<192x1024xf32, #tpu.memory_space<vmem>>, %arg2: memref<1024x256xf32, #tpu.memory_space<vmem>>, %arg3: memref<1x256xf32, #tpu.memory_space<vmem>>, %arg4: memref<192x256xf32, #tpu.memory_space<vmem>>, %arg5: memref<192x256xf32, #tpu.memory_space<vmem>>) attributes {dimension_semantics = [#tpu.dimension_semantics<parallel>], iteration_bounds = array<i64: 2>, scalar_prefetch = 0 : i64, scratch_operands = 0 : i64, tpu.core_type = #tpu.core_type<tc>, window_params = [{transform_indices = @transform_0, window_bounds = array<i64: 192, 1024>}, {pipeline_mode = #tpu.pipeline_mode<synchronous>, transform_indices = @transform_1, window_bounds = array<i64: 1024, 256>}, {pipeline_mode = #tpu.pipeline_mode<synchronous>, transform_indices = @transform_2, window_bounds = array<i64: 1, 256>}, {transform_indices = @transform_3, window_bounds = array<i64: 192, 256>}, {transform_indices = @transform_4, window_bounds = array<i64: 192, 256>}]} {
    %c0 = arith.constant 0 : index
    %c0_0 = arith.constant 0 : index
    %0 = vector.load %arg1[%c0, %c0_0] : memref<192x1024xf32, #tpu.memory_space<vmem>>, vector<192x1024xf32>
    %1 = arith.truncf %0 : vector<192x1024xf32> to vector<192x1024xbf16>
    %c0_1 = arith.constant 0 : index
    %c0_2 = arith.constant 0 : index
    %2 = vector.load %arg2[%c0_1, %c0_2] : memref<1024x256xf32, #tpu.memory_space<vmem>>, vector<1024x256xf32>
    %3 = arith.truncf %2 : vector<1024x256xf32> to vector<1024x256xbf16>
    %cst = arith.constant dense<0.000000e+00> : vector<192x256xf32>
    %4 = tpu.matmul %1, %3, %cst {dimension_numbers = #tpu.dot_dimension_numbers<[1], [0], [0], [1], [0, 0, 1, 1], [], []>} : vector<192x1024xbf16>, vector<1024x256xbf16>, vector<192x256xf32> -> vector<192x256xf32>
    %c0_3 = arith.constant 0 : index
    %c0_4 = arith.constant 0 : index
    %5 = vector.load %arg3[%c0_3, %c0_4] : memref<1x256xf32, #tpu.memory_space<vmem>>, vector<1x256xf32>
    %6 = vector.broadcast %5 : vector<1x256xf32> to vector<192x256xf32>
    %7 = arith.addf %4, %6 : vector<192x256xf32>
    %c0_5 = arith.constant 0 : index
    %c0_6 = arith.constant 0 : index
    %8 = vector.load %arg4[%c0_5, %c0_6] : memref<192x256xf32, #tpu.memory_space<vmem>>, vector<192x256xf32>
    %9 = arith.addf %7, %8 : vector<192x256xf32>
    %c0_7 = arith.constant 0 : index
    %c0_8 = arith.constant 0 : index
    %10 = vector.load %arg5[%c0_7, %c0_8] : memref<192x256xf32, #tpu.memory_space<vmem>>, vector<192x256xf32>
    tpu.vector_store %arg5[%c0_7, %c0_8], %9 {strides = array<i32>} : memref<192x256xf32, #tpu.memory_space<vmem>>, vector<192x256xf32>,
    return
  }
  func.func @transform_0(%arg0: i32) -> (i32, i32) {
    %c0_i32 = arith.constant 0 : i32
    %c0_i32_0 = arith.constant 0 : i32
    return %arg0, %c0_i32 : i32, i32
  }
  func.func @transform_1(%arg0: i32) -> (i32, i32) {
    %c0_i32 = arith.constant 0 : i32
    %c0_i32_0 = arith.constant 0 : i32
    %c0_i32_1 = arith.constant 0 : i32
    return %c0_i32, %c0_i32_0 : i32, i32
  }
  func.func @transform_2(%arg0: i32) -> (i32, i32) {
    %c0_i32 = arith.constant 0 : i32
    %c0_i32_0 = arith.constant 0 : i32
    %c0_i32_1 = arith.constant 0 : i32
    return %c0_i32, %c0_i32_0 : i32, i32
  }
  func.func @transform_3(%arg0: i32) -> (i32, i32) {
    %c0_i32 = arith.constant 0 : i32
    %c0_i32_0 = arith.constant 0 : i32
    return %arg0, %c0_i32 : i32, i32
  }
  func.func @transform_4(%arg0: i32) -> (i32, i32) {
    %c0_i32 = arith.constant 0 : i32
    %c0_i32_0 = arith.constant 0 : i32
    return %arg0, %c0_i32 : i32, i32
  }
}

</mosaic_0001>

<bundles_post_ra>
// kernel: tpu_custom_call.1
= control target key start
LH: loop header
LB: loop body
LE: loop exit
PB: predicated region body
PF: predicated region fallthrough
CT: control target
= control target key end

     0   :  { %s2925_s0 = inlined_call_operand.hbm [shape: f32[384,1024], index: 0, kind: input, shape index: {}]   ;;  %s2926_s1 = inlined_call_operand.hbm [shape: f32[1024,256], index: 1, kind: input, shape index: {}]   ;;  %s2927_s2 = inlined_call_operand.hbm [shape: f32[1,256], index: 2, kind: input, shape index: {}]   ;;  %s2928_s3 = inlined_call_operand.hbm [shape: f32[384,256], index: 3, kind: input, shape index: {}]   ;;  %s2929_s4 = inlined_call_operand.hbm [shape: f32[384,256], index: 4, kind: output, shape index: {}]  }
   0x1   :  { %2935 = sst [smem:[#allocation15_spill]] %s2925_s0 }
   0x2   :  { %9 = vsyncpa [#allocation3], 0 }
   0x3   :  { %11 = vsyncpa [#allocation3 + $0x1], 0 }
   0x4   :  { %12 = vsyncpa [#allocation6], 0 }
   0x5   :  { %13 = vsyncpa [#allocation9], 0 }
   0x6   :  { %15 = vsyncpa [#allocation9 + $0x1], 0 }
   0x7   :  { %16 = vsyncpa [#allocation4], 0 }
   0x8   :  { %18 = vsyncpa [#allocation4 + $0x1], 0  ;;  %s2183_s15 = smov 0   ;;  %s2185_s16 = smov 0  }
   0x9   :  { %s2187_s17 = smov 0   ;;  %s2189_s18 = smov 0  }
   0xa LB: > { %s2204_s19 = sadd.s32 4294967295, %s2145_s18   ;;  %s1858_s20 = sadd.s32 4294967294, %s2145_s18   ;;  %s2145_s18 = sphi %s2189_s18, %s2955_s18   ;;  %s2141_s17 = sphi %s2187_s17, %s2954_s17   ;;  %s2137_s16 = sphi %s2185_s16, %s2953_s16   ;;  %s2133_s15 = sphi %s2183_s15, %s2952_s15  }
   0xb   : > { %s2208_s21 = sadd.s32 1, %s2145_s18   ;;  %s31_s22 = sadd.s32 1, %s2141_s17 }
   0xc   : > { %s28_s23 = ssub.s32 %s2145_s18, %s2208_s21  ;;  %p38_p0 = scmp.ne.s32.totalorder %s2141_s17, %s2137_s16 }
   0xd   : > { %p29_p1 = scmp.eq.s32.totalorder %s28_s23, 0  ;;  %p39_p2 = scmp.eq.s32.totalorder %s2145_s18, 0 }
   0xe   : > { %p44_p3 = scmp.ne.s32.totalorder %s2137_s16, %s2133_s15  ;;  %p2931_p4 = scmp.eq.s32.totalorder %s2204_s19, 0 }
   0xf   : > { %s2220_s24 = scalar_select %p29_p1, %s2141_s17, %s31_s22  }
  0x10   : > { %p2222_p5 = por %p39_p2, %p38_p0  ;;  %p2228_p6 = por %p2931_p4, %p44_p3 }
  0x11   : > { %p136_p7 = scmp.eq.s32.totalorder %s2204_s19, 1  ;;  %p142_p8 = scmp.eq.s32.totalorder %s1858_s20, 1 }
  0x12   : > { %s2937_s26 = scalar_select %p2228_p6, 1, 0 }
  0x13   : > { %p1859_p9 = scmp.ge.s32.totalorder %s2145_s18, 1  ;;  %p149_p10 = scmp.lt.s32.totalorder %s2145_s18, 3 }
  0x14   : > { %p2235_p11 = por %p136_p7, %p38_p0  ;;  %p2239_p12 = por %p142_p8, %p44_p3 }
  0x15   : > { %p2243_p13 = pnand %p1859_p9, %p149_p10  ;;  %s2147_s30 = smov [#allocation5]  }
  0x16   : > { %s2938_s27 = scalar_select %p2235_p11, 1, 0 }
  0x17   : > { %s2939_s28 = scalar_select %p2239_p12, 1, 0 }
  0x18   : > { %p1901_p1 = pneg %p2243_p13  ;;  %s161_s5 = sshll.u32 %s2147_s30, 4  ;;  %s162_s5 = int_to_ptr.vmem [resolvable:$true] %s161_s5 }
  0x19   : > { %p1921_p3 = scmp.lt.s32.totalorder %s2145_s18, 2  ;;  %s2148_s7 = smov [#allocation7]  }
  0x1a   : > { %p2251_p2 = pnand %p1901_p1, %p2931_p4  ;;  %s175_s8 = sshll.u32 %s2148_s7, 4  ;;  %s176_s8 = int_to_ptr.vmem [resolvable:$true] %s175_s8 }
  0x1b   : > { %s1976_s9 = scalar_lea.vmem %s162_s5, 32768  ;;  %p1984_p12 = scmp.lt.s32.totalorder %s162_s5, %s162_s5 }
  0x1c   : > { %p1967_p7 = pneg %p2251_p2  ;;  %p1977_p8 = scmp.ne.s32.totalorder %s162_s5, %s1976_s9 }
  0x1d   : > { %p1985_p11 = scmp.lt.s32.totalorder %s1976_s9, %s1976_s9 }
  0x1e   : > { %p1979_p9 = pnand %p1977_p8, %p1967_p7 }
  0x1f   : > { %p1986_p1 = por %p1985_p11, %p1984_p12 }
  0x20   : > { %p1980_p10 = pneg %p1979_p9 }
  0x22   : > { %p1987_p4 = pnand %p1986_p1, %p1980_p10 }
  0x24   : > { %1990 = shalt.err (!%p1987_p4)
}
  0x25   : > { %s2933_s10 = smov 256   ;;  %s2934_s11 = smov 16  }
  0x26   : > { %1904 = dma.hbm_to_vmem [thread:$0]  (!%p2251_p2), %s2926_s1, 32768, %s162_s5, [#allocation6], %s2933_s10, %s2933_s10, %s2934_s11  }
  0x27   : > { %s2271_s14 = sand.u32 1, %s2141_s17   ;;  %s2002_s20 = scalar_lea.vmem %s176_s8, 32 }
  0x28   : > { %p2003_p11 = scmp.ne.s32.totalorder %s176_s8, %s2002_s20  ;;  %p2010_p8 = scmp.lt.s32.totalorder %s176_s8, %s176_s8 }
  0x29   : > { %p2011_p9 = scmp.lt.s32.totalorder %s2002_s20, %s2002_s20 }
  0x2a   : > { %p2005_p4 = pnand %p2003_p11, %p1967_p7 }
  0x2b   : > { %p2012_p10 = por %p2011_p9, %p2010_p8 }
  0x2c   : > { %p2006_p12 = pneg %p2005_p4 }
  0x2e   : > { %p2013_p1 = pnand %p2012_p10, %p2006_p12 }
  0x30   : > { %2016 = shalt.err (!%p2013_p1)
}
  0x31   : > { %1907 = dma.hbm_to_vmem [thread:$0]  (!%p2251_p2), %s2927_s2, 32, %s176_s8, [#allocation6]  }
  0x32   : > { %s1883_s30 = smul.u32 1536, %s2271_s14  ;;  %p2287_p7 = pnand %p1921_p3, %p2222_p5 }
  0x33   : > { %s1880_s5 = smul.u32 24576, %s2145_s18  ;;  %s2943_s0 = sld [smem:[#allocation15_spill]] }
  0x34   : > { %s190_s13 = scalar_lea.vmem [#allocation2], %s1883_s30  ;;  %s187_s25 = scalar_lea.sflag [#allocation3], %s2271_s14 }
  0x35   : > { %s198_s8 = sshll.u32 %s190_s13, 4  ;;  %p2019_p2 = pneg %p2287_p7  ;;  %s2296_s8 = int_to_ptr.vmem [resolvable:$true] %s198_s8 }
  0x39   : > { %s2294_s6 = scalar_lea.hbm %s2943_s0, %s1880_s5  ;;  %s2022_s5 = scalar_lea.hbm %s2943_s0, 49152 }
  0x3a   : > { %s2017_s20 = scalar_lea.hbm %s2294_s6, 24576  ;;  %p2023_p4 = scmp.lt.s32.totalorder %s2294_s6, %s2943_s0 }
  0x3b   : > { %p2018_p5 = scmp.ne.s32.totalorder %s2294_s6, %s2017_s20  ;;  %p2024_p12 = scmp.lt.s32.totalorder %s2022_s5, %s2017_s20 }
  0x3d   : > { %p2020_p3 = pnand %p2019_p2, %p2018_p5  ;;  %p2025_p8 = por %p2024_p12, %p2023_p4 }
  0x3f   : > { %p2021_p11 = pneg %p2020_p3 }
  0x41   : > { %p2026_p9 = pnand %p2025_p8, %p2021_p11 }
  0x43   : > { %2029 = shalt.err (!%p2026_p9)
}
  0x44   : > { %s2030_s30 = scalar_lea.vmem %s2296_s8, 24576  ;;  %s2151_s13 = smov [#allocation2]  }
  0x45   : > { %p2031_p10 = scmp.ne.s32.totalorder %s2296_s8, %s2030_s30  ;;  %s2035_s22 = sshll.u32 %s2151_s13, 4  ;;  %s2036_s22 = int_to_ptr.vmem [resolvable:$false] %s2035_s22 }
  0x46   : > { %s2037_s23 = scalar_lea.vmem %s2036_s22, 49152  ;;  %p2038_p3 = scmp.lt.s32.totalorder %s2296_s8, %s2036_s22 }
  0x47   : > { %p2033_p1 = pnand %p2031_p10, %p2019_p2  ;;  %p2039_p0 = scmp.lt.s32.totalorder %s2037_s23, %s2030_s30 }
  0x49   : > { %p2034_p5 = pneg %p2033_p1  ;;  %p2040_p6 = por %p2039_p0, %p2038_p3 }
  0x4b   : > { %p2041_p4 = pnand %p2040_p6, %p2034_p5 }
  0x4d   : > { %2044 = shalt.err (!%p2041_p4)
}
  0x4e   : > { %s2152_s20 = smov 1024   ;;  %s2153_s5 = smov 64  }
  0x4f   : > { %1911 = dma.hbm_to_vmem [thread:$0]  (!%p2287_p7), %s2294_s6, 24576, %s2296_s8, %s187_s25, %s2152_s20, %s2152_s20, %s2153_s5  }
  0x50   : > { %s1884_s9 = smul.u32 384, %s2271_s14  ;;  %s209_s11 = scalar_lea.sflag [#allocation9], %s2271_s14 }
  0x51   : > { %s1881_s12 = smul.u32 6144, %s2145_s18  ;;  %s2050_s25 = scalar_lea.hbm %s2928_s3, 12288 }
  0x52   : > { %s212_s23 = scalar_lea.vmem [#allocation8], %s1884_s9 }
  0x53   : > { %s2330_s22 = scalar_lea.hbm %s2928_s3, %s1881_s12  ;;  %s220_s10 = sshll.u32 %s212_s23, 4  ;;  %s2332_s10 = int_to_ptr.vmem [resolvable:$true] %s220_s10 }
  0x54   : > { %s2045_s0 = scalar_lea.hbm %s2330_s22, 6144  ;;  %p2051_p12 = scmp.lt.s32.totalorder %s2330_s22, %s2928_s3 }
  0x55   : > { %p2046_p6 = scmp.ne.s32.totalorder %s2330_s22, %s2045_s0  ;;  %p2052_p8 = scmp.lt.s32.totalorder %s2050_s25, %s2045_s0 }
  0x57   : > { %p2048_p0 = pnand %p2046_p6, %p2019_p2  ;;  %p2053_p9 = por %p2052_p8, %p2051_p12 }
  0x59   : > { %p2049_p11 = pneg %p2048_p0 }
  0x5b   : > { %p2054_p10 = pnand %p2053_p9, %p2049_p11 }
  0x5d   : > { %2057 = shalt.err (!%p2054_p10)
}
  0x5e   : > { %s2058_s14 = scalar_lea.vmem %s2332_s10, 6144  ;;  %s2154_s9 = smov [#allocation8]  }
  0x5f   : > { %p2059_p1 = scmp.ne.s32.totalorder %s2332_s10, %s2058_s14  ;;  %s2063_s12 = sshll.u32 %s2154_s9, 4  ;;  %s2064_s12 = int_to_ptr.vmem [resolvable:$false] %s2063_s12 }
  0x60   : > { %s2065_s13 = scalar_lea.vmem %s2064_s12, 12288  ;;  %p2066_p4 = scmp.lt.s32.totalorder %s2332_s10, %s2064_s12 }
  0x61   : > { %p2061_p5 = pnand %p2059_p1, %p2019_p2  ;;  %p2067_p6 = scmp.lt.s32.totalorder %s2065_s13, %s2058_s14 }
  0x63   : > { %p2062_p3 = pneg %p2061_p5  ;;  %p2068_p0 = por %p2067_p6, %p2066_p4 }
  0x65   : > { %p2069_p12 = pnand %p2068_p0, %p2062_p3 }
  0x67   : > { %2072 = shalt.err (!%p2069_p12)
}
  0x68   : > { %s2944_s0 = smov 16   ;;  %s2945_s30 = smov 256  }
  0x69   : > { %1914 = dma.hbm_to_vmem [thread:$0]  (!%p2287_p7), %s2330_s22, 6144, %s2332_s10, %s209_s11, %s2945_s30, %s2945_s30, %s2944_s0  }
  0x6a   : > { %232 = sbr.rel (%p2243_p13) target bundleno = 590 (0x24e), region = 36  ;;  %s2363_s23 = sand.u32 (!%p2243_p13), 1, %s2137_s16  }
  0x6b   : > { %s1885_s6 = smul.u32 (!%p2243_p13), 1536, %s2363_s23  ;;  %s235_s8 = scalar_lea.sflag (!%p2243_p13), [#allocation3], %s2363_s23 }
  0x6c   : > { %p2946_p2 = scmp.ne.s32.totalorder (!%p2243_p13), %s2937_s26, 0 }
  0x6d   : > { %s2367_s25 = scalar_lea.vmem (!%p2243_p13), [#allocation2], %s1885_s6 }
  0x6f   : > { %2116 = dma.done.wait (%p2946_p2), %s235_s8, 24576  }
  0x70   : > { %2118 = vsyncadd (%p2946_p2), %s235_s8, 4294942720  ;;  %p2947_p7 = scmp.eq.s32.totalorder %s2204_s19, 0 }
  0x72   : > { %2120 = dma.done.wait (%p2947_p7), [#allocation6], 32800   ;;  %p2948_p13 = pmov %p2947_p7 }
  0x73   : > { %s1886_s29 = smul.u32 384, %s2363_s23  ;;  %s252_s10 = scalar_lea.sflag [#allocation9], %s2363_s23 }
  0x74   : > { %2122 = vsyncadd (%p2948_p13), [#allocation6], 4294934496 }
  0x75   : > { %s2381_s11 = scalar_lea.vmem [#allocation8], %s1886_s29 }
  0x76   : > { %2124 = dma.done.wait (%p2946_p2), %s252_s10, 6144  }
  0x77   : > { %2126 = vsyncadd (%p2946_p2), %s252_s10, 4294961152  ;;  %v605_v0 = vld [vmem:[#allocation5 + $0xe8] sm:$0xff]  ;;  %v607_v1 = vld [vmem:[#allocation5 + $0xf8] sm:$0xff]  ;;  %s2735_s26 = scalar_lea.vmem [#allocation10], %s1886_s29  ;;  %s1882_s7 = smul.u32 6144, %s2204_s19 }
  0x78   : > { %v669_v2 = vld [vmem:[#allocation5 + $0x2e8] sm:$0xff]  ;;  %v847_v3 = vpack.c.bf16 %v607_v1, %v605_v0  ;;  %v671_v4 = vld [vmem:[#allocation5 + $0x2f8] sm:$0xff]  ;;  %v604_v5 = vld [vmem:[#allocation5 + $0xe0] sm:$0xff]  ;;  %s1743_s22 = sshll.u32 %s2735_s26, 4  ;;  %s1729_s19 = scalar_lea.sflag [#allocation4], %s2363_s23  ;;  %s2880_s22 = int_to_ptr.vmem [resolvable:$true] %s1743_s22 }
  0x79   : > { %v606_v6 = vld [vmem:[#allocation5 + $0xf0] sm:$0xff]  ;;  %v879_v7 = vpack.c.bf16 %v671_v4, %v669_v2  ;;  %v668_v9 = vld [vmem:[#allocation5 + $0x2e0] sm:$0xff]  ;;  %v601_v11 = vld [vmem:[#allocation5 + $0xc8] sm:$0xff]  ;;  %s2878_s14 = scalar_lea.hbm %s2929_s4, %s1882_s7  ;;  %s2073_s9 = scalar_lea.vmem %s2880_s22, 6144 }
  0x7a   : > { %v846_v8 = vpack.c.bf16 %v606_v6, %v604_v5  ;;  %v670_v10 = vld [vmem:[#allocation5 + $0x2f0] sm:$0xff]  ;;  %972 = vmatprep.subr.bf16.mxu0 %v847_v3  ;;  %v603_v13 = vld [vmem:[#allocation5 + $0xd8] sm:$0xff]  ;;  %v665_v14 = vld [vmem:[#allocation5 + $0x2c8] sm:$0xff]  ;;  %p2074_p11 = scmp.ne.s32.totalorder %s2880_s22, %s2073_s9  ;;  %p2949_p8 = scmp.ne.s32.totalorder %s2938_s27, 0 }
  0x7b   : > { %v878_v12 = vpack.c.bf16 %v670_v10, %v668_v9  ;;  %v667_v15 = vld [vmem:[#allocation5 + $0x2d8] sm:$0xff]  ;;  %1125 = vmatprep.subr.bf16.mxu1 %v879_v7  ;;  %v845_v16 = vpack.c.bf16 %v603_v13, %v601_v11  ;;  %v600_v18 = vld [vmem:[#allocation5 + $0xc0] sm:$0xff]  ;;  %v602_v19 = vld [vmem:[#allocation5 + $0xd0] sm:$0xff]  ;;  %s2155_s12 = smov [#allocation10]  }
  0x7c   : > { %973 = vmatpush1.bf16.msra.mxu0 %v846_v8  ;;  %v877_v17 = vpack.c.bf16 %v667_v15, %v665_v14  ;;  %v664_v20 = vld [vmem:[#allocation5 + $0x2c0] sm:$0xff]  ;;  %v844_v21 = vpack.c.bf16 %v602_v19, %v600_v18  ;;  %v666_v22 = vld [vmem:[#allocation5 + $0x2d0] sm:$0xff]  ;;  %v597_v23 = vld [vmem:[#allocation5 + $0xa8] sm:$0xff]  ;;  %p2075_p9 = pnand %p2074_p11, %p2949_p8  ;;  %s2077_s13 = sshll.u32 %s2155_s12, 4  ;;  %s2078_s13 = int_to_ptr.vmem [resolvable:$false] %s2077_s13 }
  0x7d   : > { %1126 = vmatpush1.bf16.msra.mxu1 %v878_v12  ;;  %v599_v24 = vld [vmem:[#allocation5 + $0xb8] sm:$0xff]  ;;  %974 = vmatprep.subr.bf16.mxu0 %v845_v16  ;;  %v876_v25 = vpack.c.bf16 %v666_v22, %v664_v20  ;;  %v661_v27 = vld [vmem:[#allocation5 + $0x2a8] sm:$0xff]  ;;  %v596_v29 = vld [vmem:[#allocation5 + $0xa0] sm:$0xff]  ;;  %s2079_s0 = scalar_lea.vmem %s2078_s13, 12288  ;;  %p2080_p1 = scmp.lt.s32.totalorder %s2880_s22, %s2078_s13 }
  0x7e   : > { %1127 = vmatprep.subr.bf16.mxu1 %v877_v17  ;;  %v843_v26 = vpack.c.bf16 %v599_v24, %v597_v23  ;;  %v663_v28 = vld [vmem:[#allocation5 + $0x2b8] sm:$0xff]  ;;  %v598_v31 = vld [vmem:[#allocation5 + $0xb0] sm:$0xff]  ;;  %v660_v32 = vld [vmem:[#allocation5 + $0x2a0] sm:$0xff]  ;;  %p2076_p10 = pneg %p2075_p9  ;;  %p2081_p5 = scmp.lt.s32.totalorder %s2079_s0, %s2073_s9 }
  0x7f   : > { %v875_v30 = vpack.c.bf16 %v663_v28, %v661_v27  ;;  %v662_v33 = vld [vmem:[#allocation5 + $0x2b0] sm:$0xff]  ;;  %v842_v34 = vpack.c.bf16 %v598_v31, %v596_v29  ;;  %v593_v35 = vld [vmem:[#allocation5 + $0x88] sm:$0xff]  ;;  %v595_v36 = vld [vmem:[#allocation5 + $0x98] sm:$0xff] }
  0x80   : > { %975 = vmatpush1.bf16.msra.mxu0 %v844_v21  ;;  %v657_v37 = vld [vmem:[#allocation5 + $0x288] sm:$0xff]  ;;  %v874_v38 = vpack.c.bf16 %v662_v33, %v660_v32  ;;  %v841_v39 = vpack.c.bf16 %v595_v36, %v593_v35  ;;  %v659_v40 = vld [vmem:[#allocation5 + $0x298] sm:$0xff]  ;;  %v592_v41 = vld [vmem:[#allocation5 + $0x80] sm:$0xff]  ;;  %p2082_p3 = por %p2081_p5, %p2080_p1 }
  0x81   : > { %1128 = vmatpush1.bf16.msra.mxu1 %v876_v25  ;;  %976 = vmatprep.subr.bf16.mxu0 %v843_v26  ;;  %v594_v42 = vld [vmem:[#allocation5 + $0x90] sm:$0xff]  ;;  %v873_v43 = vpack.c.bf16 %v659_v40, %v657_v37  ;;  %v656_v44 = vld [vmem:[#allocation5 + $0x280] sm:$0xff]  ;;  %v589_v46 = vld [vmem:[#allocation5 + $0x68] sm:$0xff] }
  0x82   : > { %1129 = vmatprep.subr.bf16.mxu1 %v875_v30  ;;  %v658_v45 = vld [vmem:[#allocation5 + $0x290] sm:$0xff]  ;;  %v591_v47 = vld [vmem:[#allocation5 + $0x78] sm:$0xff]  ;;  %v653_v48 = vld [vmem:[#allocation5 + $0x268] sm:$0xff]  ;;  %v840_v50 = vpack.c.bf16 %v594_v42, %v592_v41  ;;  %p2083_p4 = pnand %p2082_p3, %p2076_p10 }
  0x83   : > { %v655_v49 = vld [vmem:[#allocation5 + $0x278] sm:$0xff]  ;;  %v872_v51 = vpack.c.bf16 %v658_v45, %v656_v44  ;;  %v839_v52 = vpack.c.bf16 %v591_v47, %v589_v46  ;;  %v588_v53 = vld [vmem:[#allocation5 + $0x60] sm:$0xff]  ;;  %v590_v54 = vld [vmem:[#allocation5 + $0x70] sm:$0xff] }
  0x84   : > { %977 = vmatpush1.bf16.msra.mxu0 %v842_v34  ;;  %v652_v55 = vld [vmem:[#allocation5 + $0x260] sm:$0xff]  ;;  %v871_v56 = vpack.c.bf16 %v655_v49, %v653_v48  ;;  %v654_v57 = vld [vmem:[#allocation5 + $0x270] sm:$0xff]  ;;  %v585_v58 = vld [vmem:[#allocation5 + $0x48] sm:$0xff]  ;;  %v838_v62 = vpack.c.bf16 %v590_v54, %v588_v53 }
  0x85   : > { %1130 = vmatpush1.bf16.msra.mxu1 %v874_v38  ;;  %978 = vmatprep.subr.bf16.mxu0 %v841_v39  ;;  %v587_v59 = vld [vmem:[#allocation5 + $0x58] sm:$0xff]  ;;  %v649_v60 = vld [vmem:[#allocation5 + $0x248] sm:$0xff]  ;;  %v870_v63 = vpack.c.bf16 %v654_v57, %v652_v55  ;;  %v584_v1 = vld [vmem:[#allocation5 + $0x40] sm:$0xff] }
  0x86   : > { %1131 = vmatprep.subr.bf16.mxu1 %v873_v43  ;;  %v651_v61 = vld [vmem:[#allocation5 + $0x258] sm:$0xff]  ;;  %v837_v0 = vpack.c.bf16 %v587_v59, %v585_v58  ;;  %v586_v2 = vld [vmem:[#allocation5 + $0x50] sm:$0xff]  ;;  %v648_v3 = vld [vmem:[#allocation5 + $0x240] sm:$0xff] }
  0x87   : > { %v869_v4 = vpack.c.bf16 %v651_v61, %v649_v60  ;;  %v650_v5 = vld [vmem:[#allocation5 + $0x250] sm:$0xff]  ;;  %v581_v6 = vld [vmem:[#allocation5 + $0x28] sm:$0xff]  ;;  %v583_v7 = vld [vmem:[#allocation5 + $0x38] sm:$0xff]  ;;  %v836_v10 = vpack.c.bf16 %v586_v2, %v584_v1 }
  0x88   : > { %979 = vmatpush1.bf16.msra.mxu0 %v840_v50  ;;  %v645_v8 = vld [vmem:[#allocation5 + $0x228] sm:$0xff]  ;;  %v647_v9 = vld [vmem:[#allocation5 + $0x238] sm:$0xff]  ;;  %v868_v11 = vpack.c.bf16 %v650_v5, %v648_v3  ;;  %v835_v12 = vpack.c.bf16 %v583_v7, %v581_v6  ;;  %v580_v13 = vld [vmem:[#allocation5 + $0x20] sm:$0xff] }
  0x89   : > { %1132 = vmatpush1.bf16.msra.mxu1 %v872_v51  ;;  %980 = vmatprep.subr.bf16.mxu0 %v839_v52  ;;  %v582_v14 = vld [vmem:[#allocation5 + $0x30] sm:$0xff]  ;;  %v644_v15 = vld [vmem:[#allocation5 + $0x220] sm:$0xff]  ;;  %v867_v16 = vpack.c.bf16 %v647_v9, %v645_v8  ;;  %v577_v18 = vld [vmem:[#allocation5 + $0x8] sm:$0xff] }
  0x8a   : > { %1133 = vmatprep.subr.bf16.mxu1 %v871_v56  ;;  %v646_v17 = vld [vmem:[#allocation5 + $0x230] sm:$0xff]  ;;  %v579_v19 = vld [vmem:[#allocation5 + $0x18] sm:$0xff]  ;;  %v641_v20 = vld [vmem:[#allocation5 + $0x208] sm:$0xff]  ;;  %v834_v22 = vpack.c.bf16 %v582_v14, %v580_v13 }
  0x8b   : > { %v643_v21 = vld [vmem:[#allocation5 + $0x218] sm:$0xff]  ;;  %v866_v23 = vpack.c.bf16 %v646_v17, %v644_v15  ;;  %v833_v24 = vpack.c.bf16 %v579_v19, %v577_v18  ;;  %v576_v25 = vld [vmem:[#allocation5] sm:$0xff]  ;;  %v578_v26 = vld [vmem:[#allocation5 + $0x10] sm:$0xff] }
  0x8c   : > { %981 = vmatpush1.bf16.msra.mxu0 %v838_v62  ;;  %v640_v27 = vld [vmem:[#allocation5 + $0x200] sm:$0xff]  ;;  %v865_v28 = vpack.c.bf16 %v643_v21, %v641_v20  ;;  %v642_v29 = vld [vmem:[#allocation5 + $0x210] sm:$0xff]  ;;  %v637_v30 = vld [vmem:[#allocation5 + $0x1e8] sm:$0xff]  ;;  %v832_v34 = vpack.c.bf16 %v578_v26, %v576_v25 }
  0x8d   : > { %1134 = vmatpush1.bf16.msra.mxu1 %v870_v63  ;;  %982 = vmatprep.subr.bf16.mxu0 %v837_v0  ;;  %v639_v31 = vld [vmem:[#allocation5 + $0x1f8] sm:$0xff]  ;;  %v701_v32 = vld [vmem:[#allocation5 + $0x3e8] sm:$0xff]  ;;  %v864_v35 = vpack.c.bf16 %v642_v29, %v640_v27  ;;  %v636_v37 = vld [vmem:[#allocation5 + $0x1e0] sm:$0xff] }
  0x8e   : > { %1135 = vmatprep.subr.bf16.mxu1 %v869_v4  ;;  %v703_v33 = vld [vmem:[#allocation5 + $0x3f8] sm:$0xff]  ;;  %v863_v36 = vpack.c.bf16 %v639_v31, %v637_v30  ;;  %v638_v38 = vld [vmem:[#allocation5 + $0x1f0] sm:$0xff]  ;;  %v700_v39 = vld [vmem:[#allocation5 + $0x3e0] sm:$0xff] }
  0x8f   : > { %v895_v40 = vpack.c.bf16 %v703_v33, %v701_v32  ;;  %v702_v41 = vld [vmem:[#allocation5 + $0x3f0] sm:$0xff]  ;;  %v633_v42 = vld [vmem:[#allocation5 + $0x1c8] sm:$0xff]  ;;  %v635_v43 = vld [vmem:[#allocation5 + $0x1d8] sm:$0xff]  ;;  %v862_v46 = vpack.c.bf16 %v638_v38, %v636_v37 }
  0x90   : > { %983 = vmatpush1.bf16.msra.mxu0 %v836_v10  ;;  %v697_v44 = vld [vmem:[#allocation5 + $0x3c8] sm:$0xff]  ;;  %v699_v45 = vld [vmem:[#allocation5 + $0x3d8] sm:$0xff]  ;;  %v894_v47 = vpack.c.bf16 %v702_v41, %v700_v39  ;;  %v861_v48 = vpack.c.bf16 %v635_v43, %v633_v42  ;;  %v632_v49 = vld [vmem:[#allocation5 + $0x1c0] sm:$0xff] }
  0x91   : > { %1136 = vmatpush1.bf16.msra.mxu1 %v868_v11  ;;  %984 = vmatprep.subr.bf16.mxu0 %v835_v12  ;;  %v634_v50 = vld [vmem:[#allocation5 + $0x1d0] sm:$0xff]  ;;  %v696_v51 = vld [vmem:[#allocation5 + $0x3c0] sm:$0xff]  ;;  %v893_v52 = vpack.c.bf16 %v699_v45, %v697_v44  ;;  %v629_v54 = vld [vmem:[#allocation5 + $0x1a8] sm:$0xff] }
  0x92   : > { %1137 = vmatprep.subr.bf16.mxu1 %v867_v16  ;;  %v698_v53 = vld [vmem:[#allocation5 + $0x3d0] sm:$0xff]  ;;  %v631_v55 = vld [vmem:[#allocation5 + $0x1b8] sm:$0xff]  ;;  %v693_v56 = vld [vmem:[#allocation5 + $0x3a8] sm:$0xff]  ;;  %v860_v58 = vpack.c.bf16 %v634_v50, %v632_v49 }
  0x93   : > { %v695_v57 = vld [vmem:[#allocation5 + $0x3b8] sm:$0xff]  ;;  %v892_v59 = vpack.c.bf16 %v698_v53, %v696_v51  ;;  %v859_v60 = vpack.c.bf16 %v631_v55, %v629_v54  ;;  %v628_v61 = vld [vmem:[#allocation5 + $0x1a0] sm:$0xff]  ;;  %v630_v62 = vld [vmem:[#allocation5 + $0x1b0] sm:$0xff] }
  0x94   : > { %985 = vmatpush1.bf16.msra.mxu0 %v834_v22  ;;  %v692_v63 = vld [vmem:[#allocation5 + $0x3a0] sm:$0xff]  ;;  %v891_v0 = vpack.c.bf16 %v695_v57, %v693_v56  ;;  %v694_v1 = vld [vmem:[#allocation5 + $0x3b0] sm:$0xff]  ;;  %v625_v2 = vld [vmem:[#allocation5 + $0x188] sm:$0xff]  ;;  %v858_v6 = vpack.c.bf16 %v630_v62, %v628_v61 }
  0x95   : > { %1138 = vmatpush1.bf16.msra.mxu1 %v866_v23  ;;  %986 = vmatprep.subr.bf16.mxu0 %v833_v24  ;;  %v627_v3 = vld [vmem:[#allocation5 + $0x198] sm:$0xff]  ;;  %v689_v4 = vld [vmem:[#allocation5 + $0x388] sm:$0xff]  ;;  %v624_v7 = vld [vmem:[#allocation5 + $0x180] sm:$0xff]  ;;  %v890_v10 = vpack.c.bf16 %v694_v1, %v692_v63 }
  0x96   : > { %1139 = vmatprep.subr.bf16.mxu1 %v865_v28  ;;  %v691_v5 = vld [vmem:[#allocation5 + $0x398] sm:$0xff]  ;;  %v626_v8 = vld [vmem:[#allocation5 + $0x190] sm:$0xff]  ;;  %v688_v9 = vld [vmem:[#allocation5 + $0x380] sm:$0xff]  ;;  %v857_v11 = vpack.c.bf16 %v627_v3, %v625_v2 }
  0x97   : > { %v690_v12 = vld [vmem:[#allocation5 + $0x390] sm:$0xff]  ;;  %v621_v13 = vld [vmem:[#allocation5 + $0x168] sm:$0xff]  ;;  %v623_v14 = vld [vmem:[#allocation5 + $0x178] sm:$0xff]  ;;  %v889_v15 = vpack.c.bf16 %v691_v5, %v689_v4  ;;  %v856_v22 = vpack.c.bf16 %v626_v8, %v624_v7 }
  0x98   : > { %987 = vmatpush1.bf16.msra.mxu0 %v832_v34  ;;  %v685_v16 = vld [vmem:[#allocation5 + $0x368] sm:$0xff]  ;;  %v687_v17 = vld [vmem:[#allocation5 + $0x378] sm:$0xff]  ;;  %v888_v25 = vpack.c.bf16 %v690_v12, %v688_v9  ;;  %v855_v26 = vpack.c.bf16 %v623_v14, %v621_v13  ;;  %v620_v27 = vld [vmem:[#allocation5 + $0x160] sm:$0xff] }
  0x99   : > { %1140 = vmatpush1.bf16.msra.mxu1 %v864_v35  ;;  %988 = vmatprep.subr.bf16.mxu0 %v863_v36  ;;  %v289_v18 = vld [vmem:[%s2367_s25 + $0x8] sm:$0xff]  ;;  %v291_v20 = vld [vmem:[%s2367_s25 + $0x18] sm:$0xff]  ;;  %v622_v28 = vld [vmem:[#allocation5 + $0x170] sm:$0xff]  ;;  %v887_v30 = vpack.c.bf16 %v687_v17, %v685_v16 }
  0x9a   : > { %1141 = vmatprep.subr.bf16.mxu1 %v895_v40  ;;  %v297_v19 = vld [vmem:[%s2367_s25 + $0x48] sm:$0xff]  ;;  %v299_v21 = vld [vmem:[%s2367_s25 + $0x58] sm:$0xff]  ;;  %v684_v29 = vld [vmem:[#allocation5 + $0x360] sm:$0xff]  ;;  %v854_v36 = vpack.c.bf16 %v622_v28, %v620_v27 }
  0x9b   : > { %v481_v23 = vpack.c.bf16 %v297_v19, %v289_v18  ;;  %v483_v24 = vpack.c.bf16 %v299_v21, %v291_v20  ;;  %v686_v31 = vld [vmem:[#allocation5 + $0x370] sm:$0xff]  ;;  %v617_v32 = vld [vmem:[#allocation5 + $0x148] sm:$0xff]  ;;  %v619_v33 = vld [vmem:[#allocation5 + $0x158] sm:$0xff] }
  0x9c   : > { %989 = vmatpush2.bf16.msra.mxu0 %v862_v46  ;;  %v681_v34 = vld [vmem:[#allocation5 + $0x348] sm:$0xff]  ;;  %v683_v35 = vld [vmem:[#allocation5 + $0x358] sm:$0xff]  ;;  %v886_v37 = vpack.c.bf16 %v686_v31, %v684_v29  ;;  %v853_v38 = vpack.c.bf16 %v619_v33, %v617_v32  ;;  %v616_v39 = vld [vmem:[#allocation5 + $0x140] sm:$0xff] }
  0x9d   : > { %1142 = vmatpush2.bf16.msra.mxu1 %v894_v47  ;;  %990 = vmatprep.subr.bf16.mxu0 %v861_v48  ;;  %v618_v40 = vld [vmem:[#allocation5 + $0x150] sm:$0xff]  ;;  %v680_v41 = vld [vmem:[#allocation5 + $0x340] sm:$0xff]  ;;  %v885_v42 = vpack.c.bf16 %v683_v35, %v681_v34  ;;  %v613_v44 = vld [vmem:[#allocation5 + $0x128] sm:$0xff] }
  0x9e   : > { %1143 = vmatprep.subr.bf16.mxu1 %v893_v52  ;;  %1004 = vmatprep.mubr.bf16.mxu0 %v481_v23  ;;  %v682_v43 = vld [vmem:[#allocation5 + $0x350] sm:$0xff]  ;;  %v615_v45 = vld [vmem:[#allocation5 + $0x138] sm:$0xff]  ;;  %v677_v46 = vld [vmem:[#allocation5 + $0x328] sm:$0xff]  ;;  %v852_v48 = vpack.c.bf16 %v618_v40, %v616_v39 }
  0x9f   : > { %1157 = vmatprep.mubr.bf16.mxu1 %v483_v24  ;;  %v679_v47 = vld [vmem:[#allocation5 + $0x338] sm:$0xff]  ;;  %v884_v49 = vpack.c.bf16 %v682_v43, %v680_v41  ;;  %v851_v50 = vpack.c.bf16 %v615_v45, %v613_v44  ;;  %v612_v51 = vld [vmem:[#allocation5 + $0x120] sm:$0xff]  ;;  %v614_v52 = vld [vmem:[#allocation5 + $0x130] sm:$0xff] }
  0xa0   : > { %991 = vmatpush2.bf16.msra.mxu0 %v860_v58  ;;  %v676_v53 = vld [vmem:[#allocation5 + $0x320] sm:$0xff]  ;;  %v883_v54 = vpack.c.bf16 %v679_v47, %v677_v46  ;;  %v678_v55 = vld [vmem:[#allocation5 + $0x330] sm:$0xff]  ;;  %v609_v56 = vld [vmem:[#allocation5 + $0x108] sm:$0xff] }
  0xa1   : > { %1144 = vmatpush2.bf16.msra.mxu1 %v892_v59  ;;  %992 = vmatprep.subr.bf16.mxu0 %v859_v60  ;;  %v611_v57 = vld [vmem:[#allocation5 + $0x118] sm:$0xff]  ;;  %v673_v58 = vld [vmem:[#allocation5 + $0x308] sm:$0xff]  ;;  %v850_v60 = vpack.c.bf16 %v614_v52, %v612_v51  ;;  %v608_v61 = vld [vmem:[#allocation5 + $0x100] sm:$0xff]  ;;  %v882_v62 = vpack.c.bf16 %v678_v55, %v676_v53 }
  0xa2   : > { %1145 = vmatprep.subr.bf16.mxu1 %v891_v0  ;;  %v675_v59 = vld [vmem:[#allocation5 + $0x318] sm:$0xff]  ;;  %v849_v63 = vpack.c.bf16 %v611_v57, %v609_v56  ;;  %v610_v0 = vld [vmem:[#allocation5 + $0x110] sm:$0xff]  ;;  %v672_v1 = vld [vmem:[#allocation5 + $0x300] sm:$0xff] }
  0xa3   : > { %v674_v2 = vld [vmem:[#allocation5 + $0x310] sm:$0xff]  ;;  %v881_v3 = vpack.c.bf16 %v675_v59, %v673_v58  ;;  %v288_v4 = vld [vmem:[%s2367_s25] sm:$0xff]  ;;  %v733_v5 = vld [vmem:[#allocation5 + $0x4e8] sm:$0xff] }
  0xa4   : > { %993 = vmatpush2.bf16.msra.mxu0 %v858_v6  ;;  %v735_v6 = vld [vmem:[#allocation5 + $0x4f8] sm:$0xff]  ;;  %v296_v7 = vld [vmem:[%s2367_s25 + $0x40] sm:$0xff]  ;;  %v797_v8 = vld [vmem:[#allocation5 + $0x6e8] sm:$0xff]  ;;  %v880_v14 = vpack.c.bf16 %v674_v2, %v672_v1 }
  0xa5   : > { %1146 = vmatpush2.bf16.msra.mxu1 %v890_v10  ;;  %994 = vmatprep.subr.bf16.mxu0 %v857_v11  ;;  %v799_v9 = vld [vmem:[#allocation5 + $0x6f8] sm:$0xff]  ;;  %v848_v10 = vpack.c.bf16 %v610_v0, %v608_v61  ;;  %v290_v11 = vld [vmem:[%s2367_s25 + $0x10] sm:$0xff]  ;;  %v732_v13 = vld [vmem:[#allocation5 + $0x4e0] sm:$0xff]  ;;  %v480_v23 = vpack.c.bf16 %v296_v7, %v288_v4 }
  0xa6   : > { %1147 = vmatprep.subr.bf16.mxu1 %v889_v15  ;;  %v298_v12 = vld [vmem:[%s2367_s25 + $0x50] sm:$0xff]  ;;  %v911_v15 = vpack.c.bf16 %v735_v6, %v733_v5  ;;  %v796_v17 = vld [vmem:[#allocation5 + $0x6e0] sm:$0xff]  ;;  %v943_v19 = vpack.c.bf16 %v799_v9, %v797_v8  ;;  %v729_v20 = vld [vmem:[#allocation5 + $0x4c8] sm:$0xff] }
  0xa7   : > { %v734_v16 = vld [vmem:[#allocation5 + $0x4f0] sm:$0xff]  ;;  %v731_v21 = vld [vmem:[#allocation5 + $0x4d8] sm:$0xff]  ;;  %v313_v24 = vld [vmem:[%s2367_s25 + $0xc8] sm:$0xff]  ;;  %v482_v27 = vpack.c.bf16 %v298_v12, %v290_v11 }
  0xa8   : > { %995 = vmatpush2.bf16.msra.mxu0 %v856_v22  ;;  %v798_v18 = vld [vmem:[#allocation5 + $0x6f0] sm:$0xff]  ;;  %v305_v22 = vld [vmem:[%s2367_s25 + $0x88] sm:$0xff]  ;;  %v910_v28 = vpack.c.bf16 %v734_v16, %v732_v13  ;;  %v909_v32 = vpack.c.bf16 %v731_v21, %v729_v20  ;;  %v728_v33 = vld [vmem:[#allocation5 + $0x4c0] sm:$0xff] }
  0xa9   : > { %1148 = vmatpush2.bf16.msra.mxu1 %v888_v25  ;;  %996 = vmatprep.subr.bf16.mxu0 %v855_v26  ;;  %v307_v25 = vld [vmem:[%s2367_s25 + $0x98] sm:$0xff]  ;;  %v793_v29 = vld [vmem:[#allocation5 + $0x6c8] sm:$0xff]  ;;  %v942_v31 = vpack.c.bf16 %v798_v18, %v796_v17  ;;  %v730_v34 = vld [vmem:[#allocation5 + $0x4d0] sm:$0xff] }
  0xaa   : > { %1149 = vmatprep.subr.bf16.mxu1 %v887_v30  ;;  %v315_v26 = vld [vmem:[%s2367_s25 + $0xd8] sm:$0xff]  ;;  %v792_v35 = vld [vmem:[#allocation5 + $0x6c0] sm:$0xff]  ;;  %v794_v39 = vld [vmem:[#allocation5 + $0x6d0] sm:$0xff]  ;;  %v908_v46 = vpack.c.bf16 %v730_v34, %v728_v33 }
  0xab   : > { %v795_v30 = vld [vmem:[#allocation5 + $0x6d8] sm:$0xff]  ;;  %v725_v40 = vld [vmem:[#allocation5 + $0x4a8] sm:$0xff]  ;;  %v306_v47 = vld [vmem:[%s2367_s25 + $0x90] sm:$0xff] }
  0xac   : > { %997 = vmatpush2.bf16.msra.mxu0 %v854_v36  ;;  %v489_v36 = vpack.c.bf16 %v313_v24, %v305_v22  ;;  %v727_v41 = vld [vmem:[#allocation5 + $0x4b8] sm:$0xff]  ;;  %v941_v43 = vpack.c.bf16 %v795_v30, %v793_v29  ;;  %v789_v44 = vld [vmem:[#allocation5 + $0x6a8] sm:$0xff]  ;;  %v726_v52 = vld [vmem:[#allocation5 + $0x4b0] sm:$0xff] }
  0xad   : > { %1150 = vmatpush2.bf16.msra.mxu1 %v886_v37  ;;  %998 = vmatprep.subr.bf16.mxu0 %v853_v38  ;;  %v491_v37 = vpack.c.bf16 %v315_v26, %v307_v25  ;;  %v304_v38 = vld [vmem:[%s2367_s25 + $0x80] sm:$0xff]  ;;  %v791_v45 = vld [vmem:[#allocation5 + $0x6b8] sm:$0xff]  ;;  %v907_v51 = vpack.c.bf16 %v727_v41, %v725_v40  ;;  %v321_v53 = vld [vmem:[%s2367_s25 + $0x108] sm:$0xff] }
  0xae   : > { %1151 = vmatprep.subr.bf16.mxu1 %v885_v42  ;;  %v312_v42 = vld [vmem:[%s2367_s25 + $0xc0] sm:$0xff]  ;;  %v939_v55 = vpack.c.bf16 %v791_v45, %v789_v44  ;;  %v323_v56 = vld [vmem:[%s2367_s25 + $0x118] sm:$0xff]  ;;  %v721_v61 = vld [vmem:[#allocation5 + $0x488] sm:$0xff] }
  0xaf   : > { %v331_v57 = vld [vmem:[%s2367_s25 + $0x158] sm:$0xff]  ;;  %v788_v58 = vld [vmem:[#allocation5 + $0x6a0] sm:$0xff]  ;;  %v488_v59 = vpack.c.bf16 %v312_v42, %v304_v38  ;;  %v785_v1 = vld [vmem:[#allocation5 + $0x688] sm:$0xff] }
  0xb0   : > { %999 = vmatpush2.bf16.msra.mxu0 %v852_v48  ;;  %v314_v48 = vld [vmem:[%s2367_s25 + $0xd0] sm:$0xff]  ;;  %v787_v2 = vld [vmem:[#allocation5 + $0x698] sm:$0xff]  ;;  %v499_v4 = vpack.c.bf16 %v331_v57, %v323_v56  ;;  %v720_v5 = vld [vmem:[#allocation5 + $0x480] sm:$0xff] }
  0xb1   : > { %1152 = vmatpush2.bf16.msra.mxu1 %v884_v49  ;;  %1000 = vmatprep.subr.bf16.mxu0 %v851_v50  ;;  %v724_v49 = vld [vmem:[#allocation5 + $0x4a0] sm:$0xff]  ;;  %v940_v50 = vpack.c.bf16 %v794_v39, %v792_v35  ;;  %v722_v6 = vld [vmem:[#allocation5 + $0x490] sm:$0xff]  ;;  %v717_v11 = vld [vmem:[#allocation5 + $0x468] sm:$0xff] }
  0xb2   : > { %1153 = vmatprep.subr.bf16.mxu1 %v883_v54  ;;  %v329_v54 = vld [vmem:[%s2367_s25 + $0x148] sm:$0xff]  ;;  %v906_v0 = vpack.c.bf16 %v726_v52, %v724_v49  ;;  %v320_v8 = vld [vmem:[%s2367_s25 + $0x100] sm:$0xff]  ;;  %v719_v12 = vld [vmem:[#allocation5 + $0x478] sm:$0xff]  ;;  %v904_v18 = vpack.c.bf16 %v722_v6, %v720_v5 }
  0xb3   : > { %v328_v9 = vld [vmem:[%s2367_s25 + $0x140] sm:$0xff]  ;;  %v322_v13 = vld [vmem:[%s2367_s25 + $0x110] sm:$0xff]  ;;  %v781_v20 = vld [vmem:[#allocation5 + $0x668] sm:$0xff]  ;;  %v903_v25 = vpack.c.bf16 %v719_v12, %v717_v11 }
  0xb4   : > { %1001 = vmatpush2.bf16.msra.mxu0 %v850_v60  ;;  %v790_v60 = vld [vmem:[#allocation5 + $0x6b0] sm:$0xff]  ;;  %v784_v16 = vld [vmem:[#allocation5 + $0x680] sm:$0xff]  ;;  %v783_v21 = vld [vmem:[#allocation5 + $0x678] sm:$0xff]  ;;  %v496_v30 = vpack.c.bf16 %v328_v9, %v320_v8 }
  0xb5   : > { %1154 = vmatpush2.bf16.msra.mxu1 %v882_v62  ;;  %1002 = vmatprep.subr.bf16.mxu0 %v849_v63  ;;  %v723_v62 = vld [vmem:[#allocation5 + $0x498] sm:$0xff]  ;;  %v490_v63 = vpack.c.bf16 %v314_v48, %v306_v47  ;;  %v938_v7 = vpack.c.bf16 %v790_v60, %v788_v58  ;;  %v786_v17 = vld [vmem:[#allocation5 + $0x690] sm:$0xff]  ;;  %v345_v22 = vld [vmem:[%s2367_s25 + $0x1c8] sm:$0xff] }
  0xb6   : > { %1155 = vmatprep.subr.bf16.mxu1 %v881_v3  ;;  %v497_v3 = vpack.c.bf16 %v329_v54, %v321_v53  ;;  %v347_v24 = vld [vmem:[%s2367_s25 + $0x1d8] sm:$0xff]  ;;  %v936_v26 = vpack.c.bf16 %v786_v17, %v784_v16  ;;  %v780_v29 = vld [vmem:[#allocation5 + $0x660] sm:$0xff]  ;;  %v713_v33 = vld [vmem:[#allocation5 + $0x448] sm:$0xff] }
  0xb7   : > { %v715_v34 = vld [vmem:[#allocation5 + $0x458] sm:$0xff]  ;;  %v336_v41 = vld [vmem:[%s2367_s25 + $0x180] sm:$0xff]  ;;  %v338_v48 = vld [vmem:[%s2367_s25 + $0x190] sm:$0xff] }
  0xb8   : > { %1003 = vmatpush2.bf16.msra.mxu0 %v848_v10  ;;  %v905_v10 = vpack.c.bf16 %v723_v62, %v721_v61  ;;  %v779_v38 = vld [vmem:[#allocation5 + $0x658] sm:$0xff]  ;;  %v344_v42 = vld [vmem:[%s2367_s25 + $0x1c0] sm:$0xff]  ;;  %v901_v44 = vpack.c.bf16 %v715_v34, %v713_v33  ;;  %v346_v49 = vld [vmem:[%s2367_s25 + $0x1d0] sm:$0xff] }
  0xb9   : > { %1156 = vmatpush2.bf16.msra.mxu1 %v880_v14  ;;  %1278 = vmatprep.subr.bf16.mxu0 %v911_v15  ;;  %v330_v14 = vld [vmem:[%s2367_s25 + $0x150] sm:$0xff]  ;;  %v937_v15 = vpack.c.bf16 %v787_v2, %v785_v1  ;;  %v712_v45 = vld [vmem:[#allocation5 + $0x440] sm:$0xff]  ;;  %v709_v52 = vld [vmem:[#allocation5 + $0x428] sm:$0xff]  ;;  %v504_v2 = vpack.c.bf16 %v344_v42, %v336_v41 }
  0xba   : > { %1431 = vmatprep.subr.bf16.mxu1 %v943_v19  ;;  %v337_v19 = vld [vmem:[%s2367_s25 + $0x188] sm:$0xff]  ;;  %v498_v35 = vpack.c.bf16 %v330_v14, %v322_v13  ;;  %v776_v47 = vld [vmem:[#allocation5 + $0x640] sm:$0xff]  ;;  %v711_v53 = vld [vmem:[#allocation5 + $0x438] sm:$0xff] }
  0xbb   : > { %1005 = vmatmul.mubr.bf16.vlgmr.msra.gmra.mxu0 %v480_v23  ;;  %v339_v23 = vld [vmem:[%s2367_s25 + $0x198] sm:$0xff]  ;;  %v353_v54 = vld [vmem:[%s2367_s25 + $0x208] sm:$0xff]  ;;  %v899_v62 = vpack.c.bf16 %v711_v53, %v709_v52  ;;  %v772_v1 = vld [vmem:[#allocation5 + $0x620] sm:$0xff] }
  0xbc   : > { %1158 = vmatmul.mubr.bf16.vlgmr.msra.gmra.mxu1 %v482_v27  ;;  %1279 = vmatpush1.bf16.msra.mxu0 %v910_v28  ;;  %v716_v27 = vld [vmem:[#allocation5 + $0x460] sm:$0xff]  ;;  %v718_v28 = vld [vmem:[#allocation5 + $0x470] sm:$0xff]  ;;  %v507_v39 = vpack.c.bf16 %v347_v24, %v339_v23  ;;  %v775_v56 = vld [vmem:[#allocation5 + $0x638] sm:$0xff] }
  0xbd   : > { %1432 = vmatpush1.bf16.msra.mxu1 %v942_v31  ;;  %1280 = vmatprep.subr.bf16.mxu0 %v909_v32  ;;  %v935_v31 = vpack.c.bf16 %v783_v21, %v781_v20  ;;  %v782_v32 = vld [vmem:[#allocation5 + $0x670] sm:$0xff]  ;;  %v902_v40 = vpack.c.bf16 %v718_v28, %v716_v27  ;;  %v361_v57 = vld [vmem:[%s2367_s25 + $0x248] sm:$0xff]  ;;  %v355_v58 = vld [vmem:[%s2367_s25 + $0x218] sm:$0xff] }
  0xbe   : > { %1014 = vmatprep.mubr.bf16.mxu0 %v489_v36  ;;  %1167 = vmatprep.mubr.bf16.mxu1 %v491_v37  ;;  %v505_v36 = vpack.c.bf16 %v345_v22, %v337_v19  ;;  %v777_v37 = vld [vmem:[#allocation5 + $0x648] sm:$0xff]  ;;  %v707_v6 = vld [vmem:[#allocation5 + $0x418] sm:$0xff]  ;;  %v513_v8 = vpack.c.bf16 %v361_v57, %v353_v54  ;;  %v352_v13 = vld [vmem:[%s2367_s25 + $0x200] sm:$0xff] }
  0xbf   : > { %1433 = vmatprep.subr.bf16.mxu1 %v941_v43  ;;  %v934_v43 = vpack.c.bf16 %v782_v32, %v780_v29  ;;  %v705_v5 = vld [vmem:[#allocation5 + $0x408] sm:$0xff]  ;;  %v360_v14 = vld [vmem:[%s2367_s25 + $0x240] sm:$0xff]  ;;  %v354_v20 = vld [vmem:[%s2367_s25 + $0x210] sm:$0xff] }
  0xc0   : > { %1281 = vmatpush1.bf16.msra.mxu0 %v908_v46  ;;  %v714_v46 = vld [vmem:[#allocation5 + $0x450] sm:$0xff]  ;;  %v769_v9 = vld [vmem:[#allocation5 + $0x608] sm:$0xff]  ;;  %v897_v16 = vpack.c.bf16 %v707_v6, %v705_v5  ;;  %v704_v17 = vld [vmem:[#allocation5 + $0x400] sm:$0xff] }
  0xc1   : > { %1434 = vmatpush1.bf16.msra.mxu1 %v940_v50  ;;  %1282 = vmatprep.subr.bf16.mxu0 %v907_v51  ;;  %v933_v50 = vpack.c.bf16 %v779_v38, %v777_v37  ;;  %v778_v51 = vld [vmem:[#allocation5 + $0x650] sm:$0xff]  ;;  %v900_v60 = vpack.c.bf16 %v714_v46, %v712_v45  ;;  %v768_v19 = vld [vmem:[#allocation5 + $0x600] sm:$0xff]  ;;  %v765_v24 = vld [vmem:[#allocation5 + $0x5e8] sm:$0xff]  ;;  %v512_v38 = vpack.c.bf16 %v360_v14, %v352_v13 }
  0xc2   : > { %1435 = vmatprep.subr.bf16.mxu1 %v939_v55  ;;  %v773_v55 = vld [vmem:[#allocation5 + $0x628] sm:$0xff]  ;;  %v932_v61 = vpack.c.bf16 %v778_v51, %v776_v47  ;;  %v362_v21 = vld [vmem:[%s2367_s25 + $0x250] sm:$0xff]  ;;  %v831_v28 = vld [vmem:[#allocation5 + $0x7f8] sm:$0xff] }
  0xc3   : > { %1015 = vmatmul.mubr.bf16.gmra.mxu0 %v488_v59  ;;  %v363_v59 = vld [vmem:[%s2367_s25 + $0x258] sm:$0xff]  ;;  %v770_v23 = vld [vmem:[#allocation5 + $0x610] sm:$0xff]  ;;  %v829_v27 = vld [vmem:[#allocation5 + $0x7e8] sm:$0xff] }
  0xc4   : > { %1168 = vmatmul.mubr.bf16.gmra.mxu1 %v490_v63  ;;  %1283 = vmatpush1.bf16.msra.mxu0 %v906_v0  ;;  %v708_v63 = vld [vmem:[#allocation5 + $0x420] sm:$0xff]  ;;  %v710_v0 = vld [vmem:[#allocation5 + $0x430] sm:$0xff]  ;;  %v515_v11 = vpack.c.bf16 %v363_v59, %v355_v58  ;;  %v377_v29 = vld [vmem:[%s2367_s25 + $0x2c8] sm:$0xff]  ;;  %v928_v33 = vpack.c.bf16 %v770_v23, %v768_v19 }
  0xc5   : > { %1024 = vmatprep.mubr.bf16.mxu0 %v497_v3  ;;  %1177 = vmatprep.mubr.bf16.mxu1 %v499_v4  ;;  %v931_v3 = vpack.c.bf16 %v775_v56, %v773_v55  ;;  %v774_v4 = vld [vmem:[#allocation5 + $0x630] sm:$0xff]  ;;  %v898_v12 = vpack.c.bf16 %v710_v0, %v708_v63  ;;  %v828_v37 = vld [vmem:[#allocation5 + $0x7e0] sm:$0xff]  ;;  %v761_v41 = vld [vmem:[#allocation5 + $0x5c8] sm:$0xff] }
  0xc6   : > { %1436 = vmatpush1.bf16.msra.mxu1 %v938_v7  ;;  %1284 = vmatprep.subr.bf16.mxu0 %v905_v10  ;;  %v506_v7 = vpack.c.bf16 %v346_v49, %v338_v48  ;;  %v771_v10 = vld [vmem:[#allocation5 + $0x618] sm:$0xff]  ;;  %v825_v45 = vld [vmem:[#allocation5 + $0x7c8] sm:$0xff]  ;;  %v368_v49 = vld [vmem:[%s2367_s25 + $0x280] sm:$0xff] }
  0xc7   : > { %1437 = vmatprep.subr.bf16.mxu1 %v937_v15  ;;  %v930_v15 = vpack.c.bf16 %v774_v4, %v772_v1  ;;  %v929_v22 = vpack.c.bf16 %v771_v10, %v769_v9  ;;  %v763_v42 = vld [vmem:[#allocation5 + $0x5d8] sm:$0xff]  ;;  %v760_v53 = vld [vmem:[#allocation5 + $0x5c0] sm:$0xff]  ;;  %v762_v54 = vld [vmem:[#allocation5 + $0x5d0] sm:$0xff] }
  0xc8   : > { %1285 = vmatpush1.bf16.msra.mxu0 %v904_v18  ;;  %v706_v18 = vld [vmem:[#allocation5 + $0x410] sm:$0xff]  ;;  %v827_v46 = vld [vmem:[#allocation5 + $0x7d8] sm:$0xff]  ;;  %v925_v52 = vpack.c.bf16 %v763_v42, %v761_v41  ;;  %v824_v55 = vld [vmem:[#allocation5 + $0x7c0] sm:$0xff]  ;;  %v924_v4 = vpack.c.bf16 %v762_v54, %v760_v53 }
  0xc9   : > { %1286 = vmatprep.subr.bf16.mxu0 %v903_v25  ;;  %v767_v25 = vld [vmem:[#allocation5 + $0x5f8] sm:$0xff]  ;;  %v896_v32 = vpack.c.bf16 %v706_v18, %v704_v17  ;;  %v370_v56 = vld [vmem:[%s2367_s25 + $0x290] sm:$0xff]  ;;  %v957_v58 = vpack.c.bf16 %v827_v46, %v825_v45  ;;  %v821_v63 = vld [vmem:[#allocation5 + $0x7a8] sm:$0xff] }
  0xca   : > { %1438 = vmatpush1.bf16.msra.mxu1 %v936_v26  ;;  %v369_v26 = vld [vmem:[%s2367_s25 + $0x288] sm:$0xff]  ;;  %v927_v34 = vpack.c.bf16 %v767_v25, %v765_v24  ;;  %v378_v57 = vld [vmem:[%s2367_s25 + $0x2d0] sm:$0xff]  ;;  %v823_v0 = vld [vmem:[#allocation5 + $0x7b8] sm:$0xff] }
  0xcb   : > { %1025 = vmatmul.mubr.bf16.gmra.mxu0 %v496_v30  ;;  %1439 = vmatprep.subr.bf16.mxu1 %v935_v31  ;;  %v371_v30 = vld [vmem:[%s2367_s25 + $0x298] sm:$0xff]  ;;  %v826_v59 = vld [vmem:[#allocation5 + $0x7d0] sm:$0xff]  ;;  %v393_v1 = vld [vmem:[%s2367_s25 + $0x348] sm:$0xff] }
  0xcc   : > { %1178 = vmatmul.mubr.bf16.gmra.mxu1 %v498_v35  ;;  %1034 = vmatprep.mubr.bf16.mxu0 %v505_v36  ;;  %v379_v31 = vld [vmem:[%s2367_s25 + $0x2d8] sm:$0xff]  ;;  %v764_v35 = vld [vmem:[#allocation5 + $0x5e0] sm:$0xff]  ;;  %v766_v36 = vld [vmem:[#allocation5 + $0x5f0] sm:$0xff]  ;;  %v956_v5 = vpack.c.bf16 %v826_v59, %v824_v55 }
  0xcd   : > { %1187 = vmatprep.mubr.bf16.mxu1 %v507_v39  ;;  %1287 = vmatpush1.bf16.msra.mxu0 %v902_v40  ;;  %v959_v39 = vpack.c.bf16 %v831_v28, %v829_v27  ;;  %v830_v40 = vld [vmem:[#allocation5 + $0x7f0] sm:$0xff]  ;;  %v523_v47 = vpack.c.bf16 %v379_v31, %v371_v30  ;;  %v926_v48 = vpack.c.bf16 %v766_v36, %v764_v35  ;;  %v820_v9 = vld [vmem:[#allocation5 + $0x7a0] sm:$0xff]  ;;  %v753_v13 = vld [vmem:[#allocation5 + $0x588] sm:$0xff] }
  0xce   : > { %1440 = vmatpush1.bf16.msra.mxu1 %v934_v43  ;;  %1288 = vmatprep.subr.bf16.mxu0 %v901_v44  ;;  %v514_v43 = vpack.c.bf16 %v362_v21, %v354_v20  ;;  %v521_v44 = vpack.c.bf16 %v377_v29, %v369_v26  ;;  %v958_v51 = vpack.c.bf16 %v830_v40, %v828_v37  ;;  %v755_v14 = vld [vmem:[#allocation5 + $0x598] sm:$0xff]  ;;  %v817_v17 = vld [vmem:[#allocation5 + $0x788] sm:$0xff]  ;;  %v384_v21 = vld [vmem:[%s2367_s25 + $0x300] sm:$0xff] }
  0xcf   : > { %1441 = vmatprep.subr.bf16.mxu1 %v933_v50  ;;  %v376_v50 = vld [vmem:[%s2367_s25 + $0x2c0] sm:$0xff]  ;;  %v819_v18 = vld [vmem:[#allocation5 + $0x798] sm:$0xff]  ;;  %v921_v24 = vpack.c.bf16 %v755_v14, %v753_v13  ;;  %v754_v26 = vld [vmem:[#allocation5 + $0x590] sm:$0xff] }
  0xd0   : > { %v520_v10 = vpack.c.bf16 %v376_v50, %v368_v49  ;;  %v752_v25 = vld [vmem:[#allocation5 + $0x580] sm:$0xff]  ;;  %v386_v28 = vld [vmem:[%s2367_s25 + $0x310] sm:$0xff]  ;;  %v953_v30 = vpack.c.bf16 %v819_v18, %v817_v17  ;;  %v813_v35 = vld [vmem:[#allocation5 + $0x768] sm:$0xff] }
  0xd1   : > { %1289 = vmatpush1.bf16.msra.mxu0 %v900_v60  ;;  %v757_v60 = vld [vmem:[#allocation5 + $0x5a8] sm:$0xff]  ;;  %v816_v27 = vld [vmem:[#allocation5 + $0x780] sm:$0xff]  ;;  %v394_v29 = vld [vmem:[%s2367_s25 + $0x350] sm:$0xff]  ;;  %v920_v40 = vpack.c.bf16 %v754_v26, %v752_v25 }
  0xd2   : > { %1442 = vmatpush1.bf16.msra.mxu1 %v932_v61  ;;  %1290 = vmatprep.subr.bf16.mxu0 %v899_v62  ;;  %v759_v61 = vld [vmem:[#allocation5 + $0x5b8] sm:$0xff]  ;;  %v385_v62 = vld [vmem:[%s2367_s25 + $0x308] sm:$0xff]  ;;  %v818_v31 = vld [vmem:[#allocation5 + $0x790] sm:$0xff] }
  0xd3   : > { %1035 = vmatmul.mubr.bf16.gmra.mxu0 %v504_v2  ;;  %1443 = vmatprep.subr.bf16.mxu1 %v931_v3  ;;  %v387_v2 = vld [vmem:[%s2367_s25 + $0x318] sm:$0xff]  ;;  %v923_v6 = vpack.c.bf16 %v759_v61, %v757_v60  ;;  %v409_v37 = vld [vmem:[%s2367_s25 + $0x3c8] sm:$0xff]  ;;  %v952_v41 = vpack.c.bf16 %v818_v31, %v816_v27  ;;  %v812_v45 = vld [vmem:[#allocation5 + $0x760] sm:$0xff] }
  0xd4   : > { %1188 = vmatmul.mubr.bf16.gmra.mxu1 %v506_v7  ;;  %1044 = vmatprep.mubr.bf16.mxu0 %v513_v8  ;;  %v395_v3 = vld [vmem:[%s2367_s25 + $0x358] sm:$0xff]  ;;  %v756_v7 = vld [vmem:[#allocation5 + $0x5a0] sm:$0xff]  ;;  %v758_v8 = vld [vmem:[#allocation5 + $0x5b0] sm:$0xff] }
  0xd5   : > { %1197 = vmatprep.mubr.bf16.mxu1 %v515_v11  ;;  %1291 = vmatpush1.bf16.msra.mxu0 %v898_v12  ;;  %v955_v11 = vpack.c.bf16 %v823_v0, %v821_v63  ;;  %v822_v12 = vld [vmem:[#allocation5 + $0x7b0] sm:$0xff]  ;;  %v531_v19 = vpack.c.bf16 %v395_v3, %v387_v2  ;;  %v922_v20 = vpack.c.bf16 %v758_v8, %v756_v7  ;;  %v815_v36 = vld [vmem:[#allocation5 + $0x778] sm:$0xff]  ;;  %v745_v49 = vld [vmem:[#allocation5 + $0x548] sm:$0xff] }
  0xd6   : > { %1444 = vmatpush1.bf16.msra.mxu1 %v930_v15  ;;  %1292 = vmatprep.subr.bf16.mxu0 %v897_v16  ;;  %v522_v15 = vpack.c.bf16 %v378_v57, %v370_v56  ;;  %v529_v16 = vpack.c.bf16 %v393_v1, %v385_v62  ;;  %v954_v23 = vpack.c.bf16 %v822_v12, %v820_v9  ;;  %v747_v50 = vld [vmem:[#allocation5 + $0x558] sm:$0xff]  ;;  %v809_v53 = vld [vmem:[#allocation5 + $0x748] sm:$0xff]  ;;  %v400_v57 = vld [vmem:[%s2367_s25 + $0x380] sm:$0xff] }
  0xd7   : > { %1445 = vmatprep.subr.bf16.mxu1 %v929_v22  ;;  %v392_v22 = vld [vmem:[%s2367_s25 + $0x340] sm:$0xff]  ;;  %v811_v54 = vld [vmem:[#allocation5 + $0x758] sm:$0xff]  ;;  %v917_v60 = vpack.c.bf16 %v747_v50, %v745_v49  ;;  %v746_v62 = vld [vmem:[#allocation5 + $0x550] sm:$0xff] }
  0xd8   : > { %v528_v46 = vpack.c.bf16 %v392_v22, %v384_v21  ;;  %v744_v61 = vld [vmem:[#allocation5 + $0x540] sm:$0xff]  ;;  %v402_v0 = vld [vmem:[%s2367_s25 + $0x390] sm:$0xff]  ;;  %v949_v2 = vpack.c.bf16 %v811_v54, %v809_v53  ;;  %v805_v7 = vld [vmem:[#allocation5 + $0x728] sm:$0xff] }
  0xd9   : > { %1293 = vmatpush1.bf16.msra.mxu0 %v896_v32  ;;  %v749_v32 = vld [vmem:[#allocation5 + $0x568] sm:$0xff]  ;;  %v808_v63 = vld [vmem:[#allocation5 + $0x740] sm:$0xff]  ;;  %v410_v1 = vld [vmem:[%s2367_s25 + $0x3d0] sm:$0xff]  ;;  %v916_v12 = vpack.c.bf16 %v746_v62, %v744_v61 }
  0xda   : > { %1446 = vmatpush1.bf16.msra.mxu1 %v928_v33  ;;  %1294 = vmatprep.subr.bf16.mxu0 %v927_v34  ;;  %v751_v33 = vld [vmem:[#allocation5 + $0x578] sm:$0xff]  ;;  %v401_v34 = vld [vmem:[%s2367_s25 + $0x388] sm:$0xff]  ;;  %v810_v3 = vld [vmem:[#allocation5 + $0x750] sm:$0xff] }
  0xdb   : > { %1045 = vmatmul.mubr.bf16.gmra.mxu0 %v512_v38  ;;  %1447 = vmatprep.subr.bf16.mxu1 %v959_v39  ;;  %v403_v38 = vld [vmem:[%s2367_s25 + $0x398] sm:$0xff]  ;;  %v919_v42 = vpack.c.bf16 %v751_v33, %v749_v32  ;;  %v425_v9 = vld [vmem:[%s2367_s25 + $0x448] sm:$0xff]  ;;  %v948_v13 = vpack.c.bf16 %v810_v3, %v808_v63  ;;  %v804_v17 = vld [vmem:[#allocation5 + $0x720] sm:$0xff] }
  0xdc   : > { %1198 = vmatmul.mubr.bf16.gmra.mxu1 %v514_v43  ;;  %1054 = vmatprep.mubr.bf16.mxu0 %v521_v44  ;;  %v411_v39 = vld [vmem:[%s2367_s25 + $0x3d8] sm:$0xff]  ;;  %v748_v43 = vld [vmem:[#allocation5 + $0x560] sm:$0xff]  ;;  %v750_v44 = vld [vmem:[#allocation5 + $0x570] sm:$0xff] }
  0xdd   : > { %1207 = vmatprep.mubr.bf16.mxu1 %v523_v47  ;;  %1295 = vmatpush2.bf16.msra.mxu0 %v926_v48  ;;  %v951_v47 = vpack.c.bf16 %v815_v36, %v813_v35  ;;  %v814_v48 = vld [vmem:[#allocation5 + $0x770] sm:$0xff]  ;;  %v539_v55 = vpack.c.bf16 %v411_v39, %v403_v38  ;;  %v918_v56 = vpack.c.bf16 %v750_v44, %v748_v43  ;;  %v807_v8 = vld [vmem:[#allocation5 + $0x738] sm:$0xff]  ;;  %v737_v21 = vld [vmem:[#allocation5 + $0x508] sm:$0xff] }
  0xde   : > { %1448 = vmatpush2.bf16.msra.mxu1 %v958_v51  ;;  %1296 = vmatprep.subr.bf16.mxu0 %v925_v52  ;;  %v530_v51 = vpack.c.bf16 %v394_v29, %v386_v28  ;;  %v537_v52 = vpack.c.bf16 %v409_v37, %v401_v34  ;;  %v950_v59 = vpack.c.bf16 %v814_v48, %v812_v45  ;;  %v739_v22 = vld [vmem:[#allocation5 + $0x518] sm:$0xff]  ;;  %v801_v25 = vld [vmem:[#allocation5 + $0x708] sm:$0xff]  ;;  %v736_v31 = vld [vmem:[#allocation5 + $0x500] sm:$0xff] }
  0xdf   : > { %1449 = vmatprep.subr.bf16.mxu1 %v957_v58  ;;  %v408_v58 = vld [vmem:[%s2367_s25 + $0x3c0] sm:$0xff]  ;;  %v803_v26 = vld [vmem:[#allocation5 + $0x718] sm:$0xff]  ;;  %v738_v32 = vld [vmem:[#allocation5 + $0x510] sm:$0xff] }
  0xe0   : > { %v536_v18 = vpack.c.bf16 %v408_v58, %v400_v57  ;;  %v945_v33 = vpack.c.bf16 %v803_v26, %v801_v25  ;;  %v800_v34 = vld [vmem:[#allocation5 + $0x700] sm:$0xff]  ;;  %v802_v35 = vld [vmem:[#allocation5 + $0x710] sm:$0xff]  ;;  %v435_v43 = vld [vmem:[%s2367_s25 + $0x498] sm:$0xff] }
  0xe1   : > { %1297 = vmatpush2.bf16.msra.mxu0 %v924_v4  ;;  %v741_v4 = vld [vmem:[#allocation5 + $0x528] sm:$0xff]  ;;  %v416_v36 = vld [vmem:[%s2367_s25 + $0x400] sm:$0xff]  ;;  %v418_v38 = vld [vmem:[%s2367_s25 + $0x410] sm:$0xff]  ;;  %v944_v45 = vpack.c.bf16 %v802_v35, %v800_v34 }
  0xe2   : > { %1450 = vmatpush2.bf16.msra.mxu1 %v956_v5  ;;  %1298 = vmatprep.subr.bf16.mxu0 %v923_v6  ;;  %v743_v5 = vld [vmem:[#allocation5 + $0x538] sm:$0xff]  ;;  %v417_v6 = vld [vmem:[%s2367_s25 + $0x408] sm:$0xff]  ;;  %v424_v37 = vld [vmem:[%s2367_s25 + $0x440] sm:$0xff] }
  0xe3   : > { %1055 = vmatmul.mubr.bf16.gmra.mxu0 %v520_v10  ;;  %1451 = vmatprep.subr.bf16.mxu1 %v955_v11  ;;  %v419_v10 = vld [vmem:[%s2367_s25 + $0x418] sm:$0xff]  ;;  %v915_v14 = vpack.c.bf16 %v743_v5, %v741_v4  ;;  %v426_v39 = vld [vmem:[%s2367_s25 + $0x450] sm:$0xff]  ;;  %v432_v50 = vld [vmem:[%s2367_s25 + $0x480] sm:$0xff] }
  0xe4   : > { %1208 = vmatmul.mubr.bf16.gmra.mxu1 %v522_v15  ;;  %1064 = vmatprep.mubr.bf16.mxu0 %v529_v16  ;;  %v427_v11 = vld [vmem:[%s2367_s25 + $0x458] sm:$0xff]  ;;  %v740_v15 = vld [vmem:[#allocation5 + $0x520] sm:$0xff]  ;;  %v742_v16 = vld [vmem:[#allocation5 + $0x530] sm:$0xff] }
  0xe5   : > { %1217 = vmatprep.mubr.bf16.mxu1 %v531_v19  ;;  %1299 = vmatpush2.bf16.msra.mxu0 %v922_v20  ;;  %v947_v19 = vpack.c.bf16 %v807_v8, %v805_v7  ;;  %v806_v20 = vld [vmem:[#allocation5 + $0x730] sm:$0xff]  ;;  %v547_v27 = vpack.c.bf16 %v427_v11, %v419_v10  ;;  %v914_v28 = vpack.c.bf16 %v742_v16, %v740_v15  ;;  %v443_v44 = vld [vmem:[%s2367_s25 + $0x4d8] sm:$0xff]  ;;  %v449_v54 = vld [vmem:[%s2367_s25 + $0x508] sm:$0xff] }
  0xe6   : > { %1452 = vmatpush2.bf16.msra.mxu1 %v954_v23  ;;  %1300 = vmatprep.subr.bf16.mxu0 %v921_v24  ;;  %v538_v23 = vpack.c.bf16 %v410_v1, %v402_v0  ;;  %v545_v24 = vpack.c.bf16 %v425_v9, %v417_v6  ;;  %v946_v29 = vpack.c.bf16 %v806_v20, %v804_v17  ;;  %v442_v53 = vld [vmem:[%s2367_s25 + $0x4d0] sm:$0xff]  ;;  %v459_v57 = vld [vmem:[%s2367_s25 + $0x558] sm:$0xff]  ;;  %v448_v62 = vld [vmem:[%s2367_s25 + $0x500] sm:$0xff] }
  0xe7   : > { %1453 = vmatprep.subr.bf16.mxu1 %v953_v30  ;;  %v913_v30 = vpack.c.bf16 %v739_v22, %v737_v21  ;;  %v555_v49 = vpack.c.bf16 %v443_v44, %v435_v43  ;;  %v456_v63 = vld [vmem:[%s2367_s25 + $0x540] sm:$0xff]  ;;  %v450_v0 = vld [vmem:[%s2367_s25 + $0x510] sm:$0xff]  ;;  %v473_v3 = vld [vmem:[%s2367_s25 + $0x5c8] sm:$0xff] }
  0xe8   : > { %v458_v1 = vld [vmem:[%s2367_s25 + $0x550] sm:$0xff]  ;;  %v467_v4 = vld [vmem:[%s2367_s25 + $0x598] sm:$0xff]  ;;  %v560_v6 = vpack.c.bf16 %v456_v63, %v448_v62  ;;  %v464_v10 = vld [vmem:[%s2367_s25 + $0x580] sm:$0xff] }
  0xe9   : > { %1301 = vmatpush2.bf16.msra.mxu0 %v920_v40  ;;  %v433_v40 = vld [vmem:[%s2367_s25 + $0x488] sm:$0xff]  ;;  %v475_v5 = vld [vmem:[%s2367_s25 + $0x5d8] sm:$0xff]  ;;  %v562_v7 = vpack.c.bf16 %v458_v1, %v450_v0  ;;  %v472_v11 = vld [vmem:[%s2367_s25 + $0x5c0] sm:$0xff] }
  0xea   : > { %1454 = vmatpush2.bf16.msra.mxu1 %v952_v41  ;;  %1302 = vmatprep.subr.bf16.mxu0 %v919_v42  ;;  %v441_v41 = vld [vmem:[%s2367_s25 + $0x4c8] sm:$0xff]  ;;  %v912_v42 = vpack.c.bf16 %v738_v32, %v736_v31  ;;  %v571_v9 = vpack.c.bf16 %v475_v5, %v467_v4  ;;  %v295_v16 = vld [vmem:[%s2367_s25 + $0x38] sm:$0xff]  ;;  %v292_v22 = vld [vmem:[%s2367_s25 + $0x20] sm:$0xff] }
  0xeb   : > { %1065 = vmatmul.mubr.bf16.gmra.mxu0 %v528_v46  ;;  %1455 = vmatprep.subr.bf16.mxu1 %v951_v47  ;;  %v544_v46 = vpack.c.bf16 %v424_v37, %v416_v36  ;;  %v546_v47 = vpack.c.bf16 %v426_v39, %v418_v38  ;;  %v553_v48 = vpack.c.bf16 %v441_v41, %v433_v40  ;;  %v301_v15 = vld [vmem:[%s2367_s25 + $0x68] sm:$0xff]  ;;  %v303_v17 = vld [vmem:[%s2367_s25 + $0x78] sm:$0xff]  ;;  %v302_v25 = vld [vmem:[%s2367_s25 + $0x70] sm:$0xff] }
  0xec   : > { %1218 = vmatmul.mubr.bf16.gmra.mxu1 %v530_v51  ;;  %1074 = vmatprep.mubr.bf16.mxu0 %v537_v52  ;;  %v440_v51 = vld [vmem:[%s2367_s25 + $0x4c0] sm:$0xff]  ;;  %v434_v52 = vld [vmem:[%s2367_s25 + $0x490] sm:$0xff]  ;;  %v487_v21 = vpack.c.bf16 %v303_v17, %v295_v16  ;;  %v309_v26 = vld [vmem:[%s2367_s25 + $0xa8] sm:$0xff] }
  0xed   : > { %1227 = vmatprep.mubr.bf16.mxu1 %v539_v55  ;;  %1303 = vmatpush2.bf16.msra.mxu0 %v918_v56  ;;  %v457_v55 = vld [vmem:[%s2367_s25 + $0x548] sm:$0xff]  ;;  %v451_v56 = vld [vmem:[%s2367_s25 + $0x518] sm:$0xff]  ;;  %v552_v58 = vpack.c.bf16 %v440_v51, %v432_v50  ;;  %v308_v34 = vld [vmem:[%s2367_s25 + $0xa0] sm:$0xff] }
  0xee   : > { %1456 = vmatpush2.bf16.msra.mxu1 %v950_v59  ;;  %1304 = vmatprep.subr.bf16.mxu0 %v917_v60  ;;  %v554_v59 = vpack.c.bf16 %v442_v53, %v434_v52  ;;  %v561_v60 = vpack.c.bf16 %v457_v55, %v449_v54  ;;  %v563_v61 = vpack.c.bf16 %v459_v57, %v451_v56  ;;  %v316_v35 = vld [vmem:[%s2367_s25 + $0xe0] sm:$0xff]  ;;  %v310_v36 = vld [vmem:[%s2367_s25 + $0xb0] sm:$0xff]  ;;  %v325_v38 = vld [vmem:[%s2367_s25 + $0x128] sm:$0xff] }
  0xef   : > { %1457 = vmatprep.subr.bf16.mxu1 %v949_v2  ;;  %v465_v2 = vld [vmem:[%s2367_s25 + $0x588] sm:$0xff]  ;;  %v318_v37 = vld [vmem:[%s2367_s25 + $0xf0] sm:$0xff]  ;;  %v327_v40 = vld [vmem:[%s2367_s25 + $0x138] sm:$0xff] }
  0xf0   : > { %v569_v8 = vpack.c.bf16 %v473_v3, %v465_v2  ;;  %v333_v39 = vld [vmem:[%s2367_s25 + $0x168] sm:$0xff]  ;;  %v335_v41 = vld [vmem:[%s2367_s25 + $0x178] sm:$0xff]  ;;  %v494_v43 = vpack.c.bf16 %v318_v37, %v310_v36 }
  0xf1   : > { %1305 = vmatpush2.bf16.msra.mxu0 %v916_v12  ;;  %v466_v12 = vld [vmem:[%s2367_s25 + $0x590] sm:$0xff]  ;;  %v501_v44 = vpack.c.bf16 %v333_v39, %v325_v38  ;;  %v341_v50 = vld [vmem:[%s2367_s25 + $0x1a8] sm:$0xff]  ;;  %v343_v52 = vld [vmem:[%s2367_s25 + $0x1b8] sm:$0xff] }
  0xf2   : > { %1458 = vmatpush2.bf16.msra.mxu1 %v948_v13  ;;  %1306 = vmatprep.subr.bf16.mxu0 %v915_v14  ;;  %v474_v13 = vld [vmem:[%s2367_s25 + $0x5d0] sm:$0xff]  ;;  %v293_v14 = vld [vmem:[%s2367_s25 + $0x28] sm:$0xff]  ;;  %v351_v53 = vld [vmem:[%s2367_s25 + $0x1f8] sm:$0xff] }
  0xf3   : > { %1075 = vmatmul.mubr.bf16.gmra.mxu0 %v536_v18  ;;  %1459 = vmatprep.subr.bf16.mxu1 %v947_v19  ;;  %v568_v18 = vpack.c.bf16 %v472_v11, %v464_v10  ;;  %v570_v19 = vpack.c.bf16 %v474_v13, %v466_v12  ;;  %v485_v20 = vpack.c.bf16 %v301_v15, %v293_v14  ;;  %v349_v51 = vld [vmem:[%s2367_s25 + $0x1e8] sm:$0xff]  ;;  %v359_v0 = vld [vmem:[%s2367_s25 + $0x238] sm:$0xff] }
  0xf4   : > { %1228 = vmatmul.mubr.bf16.gmra.mxu1 %v538_v23  ;;  %1084 = vmatprep.mubr.bf16.mxu0 %v545_v24  ;;  %v300_v23 = vld [vmem:[%s2367_s25 + $0x60] sm:$0xff]  ;;  %v294_v24 = vld [vmem:[%s2367_s25 + $0x30] sm:$0xff]  ;;  %v509_v56 = vpack.c.bf16 %v349_v51, %v341_v50  ;;  %v511_v57 = vpack.c.bf16 %v351_v53, %v343_v52  ;;  %v357_v62 = vld [vmem:[%s2367_s25 + $0x228] sm:$0xff] }
  0xf5   : > { %1237 = vmatprep.mubr.bf16.mxu1 %v547_v27  ;;  %1307 = vmatpush2.bf16.msra.mxu0 %v914_v28  ;;  %v317_v27 = vld [vmem:[%s2367_s25 + $0xe8] sm:$0xff]  ;;  %v311_v28 = vld [vmem:[%s2367_s25 + $0xb8] sm:$0xff]  ;;  %v486_v31 = vpack.c.bf16 %v302_v25, %v294_v24 }
  0xf6   : > { %1460 = vmatpush2.bf16.msra.mxu1 %v946_v29  ;;  %1308 = vmatprep.subr.bf16.mxu0 %v913_v30  ;;  %v319_v29 = vld [vmem:[%s2367_s25 + $0xf8] sm:$0xff]  ;;  %v484_v30 = vpack.c.bf16 %v300_v23, %v292_v22  ;;  %v493_v32 = vpack.c.bf16 %v317_v27, %v309_v26  ;;  %v365_v63 = vld [vmem:[%s2367_s25 + $0x268] sm:$0xff] }
  0xf7   : > { %1461 = vmatprep.subr.bf16.mxu1 %v945_v33  ;;  %v495_v33 = vpack.c.bf16 %v319_v29, %v311_v28  ;;  %v367_v1 = vld [vmem:[%s2367_s25 + $0x278] sm:$0xff]  ;;  %v517_v4 = vpack.c.bf16 %v365_v63, %v357_v62  ;;  %v373_v10 = vld [vmem:[%s2367_s25 + $0x2a8] sm:$0xff] }
  0xf8   : > { %v519_v5 = vpack.c.bf16 %v367_v1, %v359_v0  ;;  %v381_v11 = vld [vmem:[%s2367_s25 + $0x2e8] sm:$0xff]  ;;  %v375_v12 = vld [vmem:[%s2367_s25 + $0x2b8] sm:$0xff] }
  0xf9   : > { %1309 = vmatpush2.bf16.msra.mxu0 %v912_v42  ;;  %v492_v42 = vpack.c.bf16 %v316_v35, %v308_v34  ;;  %v383_v13 = vld [vmem:[%s2367_s25 + $0x2f8] sm:$0xff]  ;;  %v525_v16 = vpack.c.bf16 %v381_v11, %v373_v10  ;;  %v389_v22 = vld [vmem:[%s2367_s25 + $0x328] sm:$0xff] }
  0xfa   : > { %1462 = vmatpush2.bf16.msra.mxu1 %v944_v45  ;;  %v503_v45 = vpack.c.bf16 %v335_v41, %v327_v40  ;;  %v527_v17 = vpack.c.bf16 %v383_v13, %v375_v12  ;;  %v397_v23 = vld [vmem:[%s2367_s25 + $0x368] sm:$0xff]  ;;  %v391_v24 = vld [vmem:[%s2367_s25 + $0x338] sm:$0xff] }
  0xfb   : > { %1085 = vmatmul.mubr.bf16.gmra.mxu0 %v544_v46  ;;  %v324_v46 = vld [vmem:[%s2367_s25 + $0x120] sm:$0xff]  ;;  %v399_v25 = vld [vmem:[%s2367_s25 + $0x378] sm:$0xff]  ;;  %v533_v28 = vpack.c.bf16 %v397_v23, %v389_v22  ;;  %v405_v34 = vld [vmem:[%s2367_s25 + $0x3a8] sm:$0xff] }
  0xfc   : > { %1238 = vmatmul.mubr.bf16.gmra.mxu1 %v546_v47  ;;  %1094 = vmatprep.mubr.bf16.mxu0 %v553_v48  ;;  %v332_v47 = vld [vmem:[%s2367_s25 + $0x160] sm:$0xff]  ;;  %v326_v48 = vld [vmem:[%s2367_s25 + $0x130] sm:$0xff]  ;;  %v535_v29 = vpack.c.bf16 %v399_v25, %v391_v24  ;;  %v413_v35 = vld [vmem:[%s2367_s25 + $0x3e8] sm:$0xff] }
  0xfd   : > { %1247 = vmatprep.mubr.bf16.mxu1 %v555_v49  ;;  %v334_v49 = vld [vmem:[%s2367_s25 + $0x170] sm:$0xff]  ;;  %v500_v54 = vpack.c.bf16 %v332_v47, %v324_v46  ;;  %v407_v36 = vld [vmem:[%s2367_s25 + $0x3b8] sm:$0xff]  ;;  %v541_v40 = vpack.c.bf16 %v413_v35, %v405_v34  ;;  %v421_v46 = vld [vmem:[%s2367_s25 + $0x428] sm:$0xff] }
  0xfe   : > { %v502_v55 = vpack.c.bf16 %v334_v49, %v326_v48  ;;  %v415_v37 = vld [vmem:[%s2367_s25 + $0x3f8] sm:$0xff]  ;;  %v429_v47 = vld [vmem:[%s2367_s25 + $0x468] sm:$0xff]  ;;  %v960_v35 = vld [vmem:[#allocation7] sm:$0x3] }
  0xff   : > { %v543_v41 = vpack.c.bf16 %v415_v37, %v407_v36  ;;  %v423_v48 = vld [vmem:[%s2367_s25 + $0x438] sm:$0xff]  ;;  %v549_v52 = vpack.c.bf16 %v429_v47, %v421_v46 }
 0x100   : > { %v431_v49 = vld [vmem:[%s2367_s25 + $0x478] sm:$0xff] }
 0x101   : > { %v551_v53 = vpack.c.bf16 %v431_v49, %v423_v48 }
 0x103   : > { %1095 = vmatmul.mubr.bf16.gmra.mxu0 %v552_v58  ;;  %v340_v58 = vld [vmem:[%s2367_s25 + $0x1a0] sm:$0xff] }
 0x104   : > { %1248 = vmatmul.mubr.bf16.gmra.mxu1 %v554_v59  ;;  %1104 = vmatprep.mubr.bf16.mxu0 %v561_v60  ;;  %v348_v59 = vld [vmem:[%s2367_s25 + $0x1e0] sm:$0xff]  ;;  %v342_v60 = vld [vmem:[%s2367_s25 + $0x1b0] sm:$0xff] }
 0x105   : > { %1257 = vmatprep.mubr.bf16.mxu1 %v563_v61  ;;  %v350_v61 = vld [vmem:[%s2367_s25 + $0x1f0] sm:$0xff]  ;;  %v508_v2 = vpack.c.bf16 %v348_v59, %v340_v58  ;;  %v437_v58 = vld [vmem:[%s2367_s25 + $0x4a8] sm:$0xff] }
 0x106   : > { %v510_v3 = vpack.c.bf16 %v350_v61, %v342_v60  ;;  %v445_v59 = vld [vmem:[%s2367_s25 + $0x4e8] sm:$0xff]  ;;  %v439_v60 = vld [vmem:[%s2367_s25 + $0x4b8] sm:$0xff] }
 0x107   : > { %v447_v61 = vld [vmem:[%s2367_s25 + $0x4f8] sm:$0xff]  ;;  %v557_v0 = vpack.c.bf16 %v445_v59, %v437_v58 }
 0x108   : > { %v559_v1 = vpack.c.bf16 %v447_v61, %v439_v60 }
 0x10b   : > { %1105 = vmatmul.mubr.bf16.gmra.mxu0 %v560_v6  ;;  %v356_v6 = vld [vmem:[%s2367_s25 + $0x220] sm:$0xff] }
 0x10c   : > { %1258 = vmatmul.mubr.bf16.gmra.mxu1 %v562_v7  ;;  %1114 = vmatprep.mubr.bf16.mxu0 %v569_v8  ;;  %v364_v7 = vld [vmem:[%s2367_s25 + $0x260] sm:$0xff]  ;;  %v358_v8 = vld [vmem:[%s2367_s25 + $0x230] sm:$0xff] }
 0x10d   : > { %1267 = vmatprep.mubr.bf16.mxu1 %v571_v9  ;;  %v366_v9 = vld [vmem:[%s2367_s25 + $0x270] sm:$0xff]  ;;  %v516_v14 = vpack.c.bf16 %v364_v7, %v356_v6  ;;  %v453_v6 = vld [vmem:[%s2367_s25 + $0x528] sm:$0xff] }
 0x10e   : > { %v518_v15 = vpack.c.bf16 %v366_v9, %v358_v8  ;;  %v461_v7 = vld [vmem:[%s2367_s25 + $0x568] sm:$0xff]  ;;  %v455_v8 = vld [vmem:[%s2367_s25 + $0x538] sm:$0xff] }
 0x10f   : > { %v463_v9 = vld [vmem:[%s2367_s25 + $0x578] sm:$0xff]  ;;  %v565_v12 = vpack.c.bf16 %v461_v7, %v453_v6 }
 0x110   : > { %v567_v13 = vpack.c.bf16 %v463_v9, %v455_v8 }
 0x113   : > { %1115 = vmatmul.mubr.bf16.gmra.mxu0 %v568_v18  ;;  %v372_v18 = vld [vmem:[%s2367_s25 + $0x2a0] sm:$0xff] }
 0x114   : > { %1268 = vmatmul.mubr.bf16.gmra.mxu1 %v570_v19  ;;  %1310 = vmatprep.mubr.bf16.mxu0 %v485_v20  ;;  %v380_v19 = vld [vmem:[%s2367_s25 + $0x2e0] sm:$0xff]  ;;  %v374_v20 = vld [vmem:[%s2367_s25 + $0x2b0] sm:$0xff] }
 0x115   : > { %1463 = vmatprep.mubr.bf16.mxu1 %v487_v21  ;;  %v382_v21 = vld [vmem:[%s2367_s25 + $0x2f0] sm:$0xff]  ;;  %v524_v26 = vpack.c.bf16 %v380_v19, %v372_v18  ;;  %v469_v18 = vld [vmem:[%s2367_s25 + $0x5a8] sm:$0xff] }
 0x116   : > { %v526_v27 = vpack.c.bf16 %v382_v21, %v374_v20  ;;  %v477_v19 = vld [vmem:[%s2367_s25 + $0x5e8] sm:$0xff]  ;;  %v471_v20 = vld [vmem:[%s2367_s25 + $0x5b8] sm:$0xff] }
 0x117   : > { %v479_v21 = vld [vmem:[%s2367_s25 + $0x5f8] sm:$0xff]  ;;  %v573_v24 = vpack.c.bf16 %v477_v19, %v469_v18 }
 0x118   : > { %v575_v25 = vpack.c.bf16 %v479_v21, %v471_v20 }
 0x11b   : > { %1311 = vmatmul.mubr.bf16.vlgmr.msra.gmra.mxu0 %v484_v30  ;;  %v388_v30 = vld [vmem:[%s2367_s25 + $0x320] sm:$0xff] }
 0x11c   : > { %1464 = vmatmul.mubr.bf16.vlgmr.msra.gmra.mxu1 %v486_v31  ;;  %1320 = vmatprep.mubr.bf16.mxu0 %v493_v32  ;;  %v396_v31 = vld [vmem:[%s2367_s25 + $0x360] sm:$0xff]  ;;  %v390_v32 = vld [vmem:[%s2367_s25 + $0x330] sm:$0xff] }
 0x11d   : > { %1473 = vmatprep.mubr.bf16.mxu1 %v495_v33  ;;  %v398_v33 = vld [vmem:[%s2367_s25 + $0x370] sm:$0xff]  ;;  %v532_v38 = vpack.c.bf16 %v396_v31, %v388_v30 }
 0x11e   : > { %v534_v39 = vpack.c.bf16 %v398_v33, %v390_v32  ;;  %v478_v30 = vld [vmem:[%s2367_s25 + $0x5f0] sm:$0xff] }
 0x123   : > { %1321 = vmatmul.mubr.bf16.gmra.mxu0 %v492_v42  ;;  %v404_v42 = vld [vmem:[%s2367_s25 + $0x3a0] sm:$0xff] }
 0x124   : > { %1474 = vmatmul.mubr.bf16.gmra.mxu1 %v494_v43  ;;  %1330 = vmatprep.mubr.bf16.mxu0 %v501_v44  ;;  %v412_v43 = vld [vmem:[%s2367_s25 + $0x3e0] sm:$0xff]  ;;  %v406_v44 = vld [vmem:[%s2367_s25 + $0x3b0] sm:$0xff] }
 0x125   : > { %1483 = vmatprep.mubr.bf16.mxu1 %v503_v45  ;;  %v414_v45 = vld [vmem:[%s2367_s25 + $0x3f0] sm:$0xff]  ;;  %v540_v50 = vpack.c.bf16 %v412_v43, %v404_v42 }
 0x126   : > { %v542_v51 = vpack.c.bf16 %v414_v45, %v406_v44 }
 0x12b   : > { %1331 = vmatmul.mubr.bf16.gmra.mxu0 %v500_v54  ;;  %v420_v54 = vld [vmem:[%s2367_s25 + $0x420] sm:$0xff] }
 0x12c   : > { %1484 = vmatmul.mubr.bf16.gmra.mxu1 %v502_v55  ;;  %1340 = vmatprep.mubr.bf16.mxu0 %v509_v56  ;;  %v428_v55 = vld [vmem:[%s2367_s25 + $0x460] sm:$0xff]  ;;  %v422_v56 = vld [vmem:[%s2367_s25 + $0x430] sm:$0xff] }
 0x12d   : > { %1493 = vmatprep.mubr.bf16.mxu1 %v511_v57  ;;  %v430_v57 = vld [vmem:[%s2367_s25 + $0x470] sm:$0xff]  ;;  %v548_v62 = vpack.c.bf16 %v428_v55, %v420_v54 }
 0x12e   : > { %v550_v63 = vpack.c.bf16 %v430_v57, %v422_v56 }
 0x133   : > { %1341 = vmatmul.mubr.bf16.gmra.mxu0 %v508_v2  ;;  %v436_v2 = vld [vmem:[%s2367_s25 + $0x4a0] sm:$0xff] }
 0x134   : > { %1494 = vmatmul.mubr.bf16.gmra.mxu1 %v510_v3  ;;  %1350 = vmatprep.mubr.bf16.mxu0 %v517_v4  ;;  %v444_v3 = vld [vmem:[%s2367_s25 + $0x4e0] sm:$0xff]  ;;  %v438_v4 = vld [vmem:[%s2367_s25 + $0x4b0] sm:$0xff] }
 0x135   : > { %1503 = vmatprep.mubr.bf16.mxu1 %v519_v5  ;;  %v446_v5 = vld [vmem:[%s2367_s25 + $0x4f0] sm:$0xff]  ;;  %v556_v10 = vpack.c.bf16 %v444_v3, %v436_v2 }
 0x136   : > { %v558_v11 = vpack.c.bf16 %v446_v5, %v438_v4 }
 0x13b   : > { %1351 = vmatmul.mubr.bf16.gmra.mxu0 %v516_v14  ;;  %v452_v14 = vld [vmem:[%s2367_s25 + $0x520] sm:$0xff] }
 0x13c   : > { %1504 = vmatmul.mubr.bf16.gmra.mxu1 %v518_v15  ;;  %1360 = vmatprep.mubr.bf16.mxu0 %v525_v16  ;;  %v460_v15 = vld [vmem:[%s2367_s25 + $0x560] sm:$0xff]  ;;  %v454_v16 = vld [vmem:[%s2367_s25 + $0x530] sm:$0xff] }
 0x13d   : > { %1513 = vmatprep.mubr.bf16.mxu1 %v527_v17  ;;  %v462_v17 = vld [vmem:[%s2367_s25 + $0x570] sm:$0xff]  ;;  %v564_v22 = vpack.c.bf16 %v460_v15, %v452_v14 }
 0x13e   : > { %v566_v23 = vpack.c.bf16 %v462_v17, %v454_v16 }
 0x143   : > { %1361 = vmatmul.mubr.bf16.gmra.mxu0 %v524_v26  ;;  %v468_v26 = vld [vmem:[%s2367_s25 + $0x5a0] sm:$0xff] }
 0x144   : > { %1514 = vmatmul.mubr.bf16.gmra.mxu1 %v526_v27  ;;  %1370 = vmatprep.mubr.bf16.mxu0 %v533_v28  ;;  %v476_v27 = vld [vmem:[%s2367_s25 + $0x5e0] sm:$0xff]  ;;  %v962_v28 = vlaneseq }
 0x145   : > { %1523 = vmatprep.mubr.bf16.mxu1 %v535_v29  ;;  %v470_v29 = vld [vmem:[%s2367_s25 + $0x5b0] sm:$0xff]  ;;  %v572_v31 = vpack.c.bf16 %v476_v27, %v468_v26 }
 0x146   : > { %v574_v32 = vpack.c.bf16 %v478_v30, %v470_v29  ;;  %v963_v33 = vshrl.u32 %v962_v28, 7 }
 0x148   : > { %v964_v34 = vsub.s32 0, %v963_v33  ;;  %v968_v36 = vsub.s32 1, %v963_v33 }
 0x14a   : > { %v2579_v37 = vrot.slane %v960_v35, %v964_v34 }
 0x14b   : > { %1371 = vmatmul.mubr.bf16.gmra.mxu0 %v532_v38  ;;  %v2581_v38 = vrot.slane %v960_v35, %v968_v36 }
 0x14c   : > { %1524 = vmatmul.mubr.bf16.gmra.mxu1 %v534_v39  ;;  %1380 = vmatprep.mubr.bf16.mxu0 %v541_v40 }
 0x14d   : > { %1533 = vmatprep.mubr.bf16.mxu1 %v543_v41 }
 0x153   : > { %1381 = vmatmul.mubr.bf16.gmra.mxu0 %v540_v50 }
 0x154   : > { %1534 = vmatmul.mubr.bf16.gmra.mxu1 %v542_v51  ;;  %1390 = vmatprep.mubr.bf16.mxu0 %v549_v52 }
 0x155   : > { %1543 = vmatprep.mubr.bf16.mxu1 %v551_v53 }
 0x15b   : > { %1391 = vmatmul.mubr.bf16.gmra.mxu0 %v548_v62 }
 0x15c   : > { %1544 = vmatmul.mubr.bf16.gmra.mxu1 %v550_v63  ;;  %1400 = vmatprep.mubr.bf16.mxu0 %v557_v0 }
 0x15d   : > { %1553 = vmatprep.mubr.bf16.mxu1 %v559_v1 }
 0x163   : > { %1401 = vmatmul.mubr.bf16.gmra.mxu0 %v556_v10 }
 0x164   : > { %1554 = vmatmul.mubr.bf16.gmra.mxu1 %v558_v11  ;;  %1410 = vmatprep.mubr.bf16.mxu0 %v565_v12 }
 0x165   : > { %1563 = vmatprep.mubr.bf16.mxu1 %v567_v13 }
 0x16b   : > { %1411 = vmatmul.mubr.bf16.gmra.mxu0 %v564_v22 }
 0x16c   : > { %1564 = vmatmul.mubr.bf16.gmra.mxu1 %v566_v23  ;;  %1420 = vmatprep.mubr.bf16.mxu0 %v573_v24 }
 0x16d   : > { %1573 = vmatprep.mubr.bf16.mxu1 %v575_v25 }
 0x173   : > { %1421 = vmatmul.mubr.bf16.gmra.mxu0 %v572_v31 }
 0x174   : > { %1574 = vmatmul.mubr.bf16.gmra.mxu1 %v574_v32 }
 0x17b   : > { %v1006_v39 = vpop.f32.mrf.mxu0 }
 0x17c   : > { %v1007_v40 = vadd.f32 %v1006_v39, %v2579_v37  ;;  %v1159_v41 = vpop.f32.mrf.mxu1 }
 0x17d   : > { %v1008_v42 = vpop.f32.mrf.mxu0 }
 0x17e   : > { %v2584_v43 = vadd.f32 %v1159_v41, %v1007_v40  ;;  %v1009_v44 = vadd.f32 %v1008_v42, %v2581_v38  ;;  %v1161_v45 = vpop.f32.mrf.mxu1 }
 0x17f   : > { %v1010_v46 = vpop.f32.mrf.mxu0 }
 0x180   : > { %v2587_v47 = vadd.f32 %v1161_v45, %v1009_v44  ;;  %v1011_v48 = vadd.f32 %v1010_v46, %v2579_v37  ;;  %v1163_v49 = vpop.f32.mrf.mxu1 }
 0x181   : > { %v1012_v50 = vpop.f32.mrf.mxu0 }
 0x182   : > { %v2590_v51 = vadd.f32 %v1163_v49, %v1011_v48  ;;  %v1013_v52 = vadd.f32 %v1012_v50, %v2581_v38  ;;  %v1165_v53 = vpop.f32.mrf.mxu1 }
 0x183   : > { %v1016_v54 = vpop.f32.mrf.mxu0 }
 0x184   : > { %v2593_v55 = vadd.f32 %v1165_v53, %v1013_v52  ;;  %v1017_v56 = vadd.f32 %v1016_v54, %v2579_v37  ;;  %v1169_v57 = vpop.f32.mrf.mxu1 }
 0x185   : > { %v1018_v58 = vpop.f32.mrf.mxu0 }
 0x186   : > { %v2596_v59 = vadd.f32 %v1169_v57, %v1017_v56  ;;  %v1019_v60 = vadd.f32 %v1018_v58, %v2581_v38  ;;  %v1171_v61 = vpop.f32.mrf.mxu1 }
 0x187   : > { %v1020_v62 = vpop.f32.mrf.mxu0 }
 0x188   : > { %v2599_v63 = vadd.f32 %v1171_v61, %v1019_v60  ;;  %v1021_v0 = vadd.f32 %v1020_v62, %v2579_v37  ;;  %v1173_v1 = vpop.f32.mrf.mxu1 }
 0x189   : > { %v1022_v2 = vpop.f32.mrf.mxu0 }
 0x18a   : > { %v2602_v3 = vadd.f32 %v1173_v1, %v1021_v0  ;;  %v1023_v4 = vadd.f32 %v1022_v2, %v2581_v38  ;;  %v1175_v5 = vpop.f32.mrf.mxu1 }
 0x18b   : > { %v1026_v6 = vpop.f32.mrf.mxu0 }
 0x18c   : > { %v2605_v7 = vadd.f32 %v1175_v5, %v1023_v4  ;;  %v1027_v8 = vadd.f32 %v1026_v6, %v2579_v37  ;;  %v1179_v9 = vpop.f32.mrf.mxu1 }
 0x18d   : > { %v1028_v10 = vpop.f32.mrf.mxu0 }
 0x18e   : > { %v2608_v11 = vadd.f32 %v1179_v9, %v1027_v8  ;;  %v1029_v12 = vadd.f32 %v1028_v10, %v2581_v38  ;;  %v1181_v13 = vpop.f32.mrf.mxu1 }
 0x18f   : > { %v1030_v14 = vpop.f32.mrf.mxu0 }
 0x190   : > { %v2611_v15 = vadd.f32 %v1181_v13, %v1029_v12  ;;  %v1031_v16 = vadd.f32 %v1030_v14, %v2579_v37  ;;  %v1183_v17 = vpop.f32.mrf.mxu1 }
 0x191   : > { %v1032_v18 = vpop.f32.mrf.mxu0 }
 0x192   : > { %v2614_v19 = vadd.f32 %v1183_v17, %v1031_v16  ;;  %v1033_v20 = vadd.f32 %v1032_v18, %v2581_v38  ;;  %v1185_v21 = vpop.f32.mrf.mxu1 }
 0x193   : > { %v1036_v22 = vpop.f32.mrf.mxu0 }
 0x194   : > { %v2617_v23 = vadd.f32 %v1185_v21, %v1033_v20  ;;  %v1037_v24 = vadd.f32 %v1036_v22, %v2579_v37  ;;  %v1189_v25 = vpop.f32.mrf.mxu1 }
 0x195   : > { %v1038_v26 = vpop.f32.mrf.mxu0 }
 0x196   : > { %v2620_v27 = vadd.f32 %v1189_v25, %v1037_v24  ;;  %v1039_v28 = vadd.f32 %v1038_v26, %v2581_v38  ;;  %v1191_v29 = vpop.f32.mrf.mxu1 }
 0x197   : > { %v1040_v30 = vpop.f32.mrf.mxu0 }
 0x198   : > { %v2623_v31 = vadd.f32 %v1191_v29, %v1039_v28  ;;  %v1041_v32 = vadd.f32 %v1040_v30, %v2579_v37  ;;  %v1193_v33 = vpop.f32.mrf.mxu1 }
 0x199   : > { %v1042_v34 = vpop.f32.mrf.mxu0 }
 0x19a   : > { %v2626_v35 = vadd.f32 %v1193_v33, %v1041_v32  ;;  %v1043_v36 = vadd.f32 %v1042_v34, %v2581_v38  ;;  %v1195_v39 = vpop.f32.mrf.mxu1 }
 0x19b   : > { %v1046_v40 = vpop.f32.mrf.mxu0 }
 0x19c   : > { %v2629_v41 = vadd.f32 %v1195_v39, %v1043_v36  ;;  %v1047_v42 = vadd.f32 %v1046_v40, %v2579_v37  ;;  %v1199_v44 = vpop.f32.mrf.mxu1 }
 0x19d   : > { %v1048_v45 = vpop.f32.mrf.mxu0 }
 0x19e   : > { %v2632_v46 = vadd.f32 %v1199_v44, %v1047_v42  ;;  %v1049_v48 = vadd.f32 %v1048_v45, %v2581_v38  ;;  %v1201_v49 = vpop.f32.mrf.mxu1 }
 0x19f   : > { %v1050_v50 = vpop.f32.mrf.mxu0 }
 0x1a0   : > { %v2635_v52 = vadd.f32 %v1201_v49, %v1049_v48  ;;  %v1051_v53 = vadd.f32 %v1050_v50, %v2579_v37  ;;  %v1203_v54 = vpop.f32.mrf.mxu1 }
 0x1a1   : > { %v1052_v56 = vpop.f32.mrf.mxu0 }
 0x1a2   : > { %v2638_v57 = vadd.f32 %v1203_v54, %v1051_v53  ;;  %v1053_v58 = vadd.f32 %v1052_v56, %v2581_v38  ;;  %v1205_v60 = vpop.f32.mrf.mxu1 }
 0x1a3   : > { %v1056_v61 = vpop.f32.mrf.mxu0 }
 0x1a4   : > { %v2641_v62 = vadd.f32 %v1205_v60, %v1053_v58  ;;  %v1057_v0 = vadd.f32 %v1056_v61, %v2579_v37  ;;  %v1209_v1 = vpop.f32.mrf.mxu1 }
 0x1a5   : > { %v1058_v2 = vpop.f32.mrf.mxu0 }
 0x1a6   : > { %v2644_v4 = vadd.f32 %v1209_v1, %v1057_v0  ;;  %v1059_v5 = vadd.f32 %v1058_v2, %v2581_v38  ;;  %v1211_v6 = vpop.f32.mrf.mxu1 }
 0x1a7   : > { %v1060_v8 = vpop.f32.mrf.mxu0 }
 0x1a8   : > { %v2647_v9 = vadd.f32 %v1211_v6, %v1059_v5  ;;  %v1061_v10 = vadd.f32 %v1060_v8, %v2579_v37  ;;  %v1213_v12 = vpop.f32.mrf.mxu1 }
 0x1a9   : > { %v1062_v13 = vpop.f32.mrf.mxu0 }
 0x1aa   : > { %v2650_v14 = vadd.f32 %v1213_v12, %v1061_v10  ;;  %v1063_v16 = vadd.f32 %v1062_v13, %v2581_v38  ;;  %v1215_v17 = vpop.f32.mrf.mxu1 }
 0x1ab   : > { %v1066_v18 = vpop.f32.mrf.mxu0 }
 0x1ac   : > { %v2653_v20 = vadd.f32 %v1215_v17, %v1063_v16  ;;  %v1067_v21 = vadd.f32 %v1066_v18, %v2579_v37  ;;  %v1219_v22 = vpop.f32.mrf.mxu1 }
 0x1ad   : > { %v1068_v24 = vpop.f32.mrf.mxu0 }
 0x1ae   : > { %v2656_v25 = vadd.f32 %v1219_v22, %v1067_v21  ;;  %v1069_v26 = vadd.f32 %v1068_v24, %v2581_v38  ;;  %v1221_v28 = vpop.f32.mrf.mxu1 }
 0x1af   : > { %v1070_v29 = vpop.f32.mrf.mxu0 }
 0x1b0   : > { %v2659_v30 = vadd.f32 %v1221_v28, %v1069_v26  ;;  %v1071_v32 = vadd.f32 %v1070_v29, %v2579_v37  ;;  %v1223_v33 = vpop.f32.mrf.mxu1 }
 0x1b1   : > { %v1072_v34 = vpop.f32.mrf.mxu0 }
 0x1b2   : > { %v2662_v36 = vadd.f32 %v1223_v33, %v1071_v32  ;;  %v1073_v39 = vadd.f32 %v1072_v34, %v2581_v38  ;;  %v1225_v40 = vpop.f32.mrf.mxu1 }
 0x1b3   : > { %v1076_v42 = vpop.f32.mrf.mxu0 }
 0x1b4   : > { %v2665_v44 = vadd.f32 %v1225_v40, %v1073_v39  ;;  %v1077_v45 = vadd.f32 %v1076_v42, %v2579_v37  ;;  %v1229_v48 = vpop.f32.mrf.mxu1 }
 0x1b5   : > { %v1078_v49 = vpop.f32.mrf.mxu0 }
 0x1b6   : > { %v2668_v50 = vadd.f32 %v1229_v48, %v1077_v45  ;;  %v1079_v53 = vadd.f32 %v1078_v49, %v2581_v38  ;;  %v1231_v54 = vpop.f32.mrf.mxu1 }
 0x1b7   : > { %v1080_v56 = vpop.f32.mrf.mxu0 }
 0x1b8   : > { %v2671_v58 = vadd.f32 %v1231_v54, %v1079_v53  ;;  %v1081_v60 = vadd.f32 %v1080_v56, %v2579_v37  ;;  %v1233_v61 = vpop.f32.mrf.mxu1 }
 0x1b9   : > { %v1082_v0 = vpop.f32.mrf.mxu0 }
 0x1ba   : > { %v2674_v1 = vadd.f32 %v1233_v61, %v1081_v60  ;;  %v1083_v2 = vadd.f32 %v1082_v0, %v2581_v38  ;;  %v1235_v5 = vpop.f32.mrf.mxu1 }
 0x1bb   : > { %v1086_v6 = vpop.f32.mrf.mxu0 }
 0x1bc   : > { %v2677_v8 = vadd.f32 %v1235_v5, %v1083_v2  ;;  %v1087_v10 = vadd.f32 %v1086_v6, %v2579_v37  ;;  %v1239_v12 = vpop.f32.mrf.mxu1 }
 0x1bd   : > { %v1088_v13 = vpop.f32.mrf.mxu0 }
 0x1be   : > { %v2680_v16 = vadd.f32 %v1239_v12, %v1087_v10  ;;  %v1089_v17 = vadd.f32 %v1088_v13, %v2581_v38  ;;  %v1241_v18 = vpop.f32.mrf.mxu1 }
 0x1bf   : > { %v1090_v21 = vpop.f32.mrf.mxu0 }
 0x1c0   : > { %v2683_v22 = vadd.f32 %v1241_v18, %v1089_v17  ;;  %v1091_v24 = vadd.f32 %v1090_v21, %v2579_v37  ;;  %v1243_v26 = vpop.f32.mrf.mxu1 }
 0x1c1   : > { %v1092_v28 = vpop.f32.mrf.mxu0 }
 0x1c2   : > { %v2686_v29 = vadd.f32 %v1243_v26, %v1091_v24  ;;  %v1093_v32 = vadd.f32 %v1092_v28, %v2581_v38  ;;  %v1245_v33 = vpop.f32.mrf.mxu1 }
 0x1c3   : > { %v1096_v34 = vpop.f32.mrf.mxu0 }
 0x1c4   : > { %v2689_v39 = vadd.f32 %v1245_v33, %v1093_v32  ;;  %v1097_v40 = vadd.f32 %v1096_v34, %v2579_v37  ;;  %v1249_v42 = vpop.f32.mrf.mxu1 }
 0x1c5   : > { %v1098_v45 = vpop.f32.mrf.mxu0 }
 0x1c6   : > { %v2692_v48 = vadd.f32 %v1249_v42, %v1097_v40  ;;  %v1099_v49 = vadd.f32 %v1098_v45, %v2581_v38  ;;  %v1251_v53 = vpop.f32.mrf.mxu1 }
 0x1c7   : > { %v1100_v54 = vpop.f32.mrf.mxu0 }
 0x1c8   : > { %v2695_v56 = vadd.f32 %v1251_v53, %v1099_v49  ;;  %v1101_v60 = vadd.f32 %v1100_v54, %v2579_v37  ;;  %v1253_v61 = vpop.f32.mrf.mxu1 }
 0x1c9   : > { %v1102_v0 = vpop.f32.mrf.mxu0 }
 0x1ca   : > { %v2698_v2 = vadd.f32 %v1253_v61, %v1101_v60  ;;  %v1103_v5 = vadd.f32 %v1102_v0, %v2581_v38  ;;  %v1255_v6 = vpop.f32.mrf.mxu1 }
 0x1cb   : > { %v1106_v10 = vpop.f32.mrf.mxu0 }
 0x1cc   : > { %v2701_v12 = vadd.f32 %v1255_v6, %v1103_v5  ;;  %v1107_v13 = vadd.f32 %v1106_v10, %v2579_v37  ;;  %v1259_v17 = vpop.f32.mrf.mxu1 }
 0x1cd   : > { %v1108_v18 = vpop.f32.mrf.mxu0 }
 0x1ce   : > { %v2704_v21 = vadd.f32 %v1259_v17, %v1107_v13  ;;  %v1109_v24 = vadd.f32 %v1108_v18, %v2581_v38  ;;  %v1261_v26 = vpop.f32.mrf.mxu1 }
 0x1cf   : > { %v1110_v28 = vpop.f32.mrf.mxu0 }
 0x1d0   : > { %v2707_v32 = vadd.f32 %v1261_v26, %v1109_v24  ;;  %v1111_v33 = vadd.f32 %v1110_v28, %v2579_v37  ;;  %v1263_v34 = vpop.f32.mrf.mxu1 }
 0x1d1   : > { %v1112_v40 = vpop.f32.mrf.mxu0 }
 0x1d2   : > { %v2710_v42 = vadd.f32 %v1263_v34, %v1111_v33  ;;  %v1113_v45 = vadd.f32 %v1112_v40, %v2581_v38  ;;  %v1265_v49 = vpop.f32.mrf.mxu1 }
 0x1d3   : > { %v1116_v53 = vpop.f32.mrf.mxu0 }
 0x1d4   : > { %v2713_v54 = vadd.f32 %v1265_v49, %v1113_v45  ;;  %v1117_v60 = vadd.f32 %v1116_v53, %v2579_v37  ;;  %v1269_v61 = vpop.f32.mrf.mxu1 }
 0x1d5   : > { %v1118_v0 = vpop.f32.mrf.mxu0 }
 0x1d6   : > { %v2716_v5 = vadd.f32 %v1269_v61, %v1117_v60  ;;  %v1119_v6 = vadd.f32 %v1118_v0, %v2581_v38  ;;  %v1271_v10 = vpop.f32.mrf.mxu1  ;;  %v1584_v60 = vld [vmem:[%s2381_s11] sm:$0xff] }
 0x1d7   : > { %v1120_v13 = vpop.f32.mrf.mxu0 }
 0x1d8   : > { %v2719_v17 = vadd.f32 %v1271_v10, %v1119_v6  ;;  %v1121_v18 = vadd.f32 %v1120_v13, %v2579_v37  ;;  %v1273_v24 = vpop.f32.mrf.mxu1  ;;  %v1585_v10 = vld [vmem:[%s2381_s11 + $0x8] sm:$0xff] }
 0x1d9   : > { %v1122_v26 = vpop.f32.mrf.mxu0 }
 0x1da   : > { %v2722_v28 = vadd.f32 %v1273_v24, %v1121_v18  ;;  %v1123_v33 = vadd.f32 %v1122_v26, %v2581_v38  ;;  %v1275_v34 = vpop.f32.mrf.mxu1 }
 0x1db   : > { %v1312_v40 = vpop.f32.mrf.mxu0 }
 0x1dc   : > { %v2725_v45 = vadd.f32 %v1275_v34, %v1123_v33  ;;  %v1313_v49 = vadd.f32 %v1312_v40, %v2584_v43  ;;  %v1465_v53 = vpop.f32.mrf.mxu1  ;;  %v1586_v33 = vld [vmem:[%s2381_s11 + $0x10] sm:$0xff] }
 0x1dd   : > { %v1314_v61 = vpop.f32.mrf.mxu0 }
 0x1de   : > { %v1466_v0 = vadd.f32 %v1465_v53, %v1313_v49  ;;  %v1315_v37 = vadd.f32 %v1314_v61, %v2587_v47  ;;  %v1467_v6 = vpop.f32.mrf.mxu1  ;;  %v1587_v53 = vld [vmem:[%s2381_s11 + $0x18] sm:$0xff] }
 0x1df   : > { %v1316_v13 = vpop.f32.mrf.mxu0 }
 0x1e0   : > { %v1632_v18 = vadd.f32 %v1584_v60, %v1466_v0  ;;  %v1468_v38 = vadd.f32 %v1467_v6, %v1315_v37  ;;  %v1317_v24 = vadd.f32 %v1316_v13, %v2590_v51  ;;  %v1469_v26 = vpop.f32.mrf.mxu1  ;;  %v1588_v6 = vld [vmem:[%s2381_s11 + $0x20] sm:$0xff] }
 0x1e1   : > { %v1318_v34 = vpop.f32.mrf.mxu0 }
 0x1e2   : > { %1680 = vst [vmem:[%s2735_s26] sm:$0xff] %v1632_v18  ;;  %v1633_v43 = vadd.f32 %v1585_v10, %v1468_v38  ;;  %v1470_v47 = vadd.f32 %v1469_v26, %v1317_v24  ;;  %v1319_v40 = vadd.f32 %v1318_v34, %v2593_v55  ;;  %v1471_v49 = vpop.f32.mrf.mxu1  ;;  %v1589_v24 = vld [vmem:[%s2381_s11 + $0x28] sm:$0xff] }
 0x1e3   : > { %v1322_v51 = vpop.f32.mrf.mxu0 }
 0x1e4   : > { %1681 = vst [vmem:[%s2735_s26 + $0x8] sm:$0xff] %v1633_v43  ;;  %v1634_v60 = vadd.f32 %v1586_v33, %v1470_v47  ;;  %v1472_v61 = vadd.f32 %v1471_v49, %v1319_v40  ;;  %v1323_v0 = vadd.f32 %v1322_v51, %v2596_v59  ;;  %v1475_v37 = vpop.f32.mrf.mxu1  ;;  %v1590_v47 = vld [vmem:[%s2381_s11 + $0x30] sm:$0xff] }
 0x1e5   : > { %v1324_v13 = vpop.f32.mrf.mxu0 }
 0x1e6   : > { %1682 = vst [vmem:[%s2735_s26 + $0x10] sm:$0xff] %v1634_v60  ;;  %v1635_v10 = vadd.f32 %v1587_v53, %v1472_v61  ;;  %v1476_v18 = vadd.f32 %v1475_v37, %v1323_v0  ;;  %v1325_v55 = vadd.f32 %v1324_v13, %v2599_v63  ;;  %v1477_v38 = vpop.f32.mrf.mxu1  ;;  %v1591_v60 = vld [vmem:[%s2381_s11 + $0x38] sm:$0xff]  ;;  %v1592_v13 = vld [vmem:[%s2381_s11 + $0x40] sm:$0xff] }
 0x1e7   : > { %v1326_v26 = vpop.f32.mrf.mxu0 }
 0x1e8   : > { %1683 = vst [vmem:[%s2735_s26 + $0x18] sm:$0xff] %v1635_v10  ;;  %v1636_v33 = vadd.f32 %v1588_v6, %v1476_v18  ;;  %v1478_v34 = vadd.f32 %v1477_v38, %v1325_v55  ;;  %v1327_v59 = vadd.f32 %v1326_v26, %v2602_v3  ;;  %v1479_v43 = vpop.f32.mrf.mxu1 }
 0x1e9   : > { %v1328_v40 = vpop.f32.mrf.mxu0 }
 0x1ea   : > { %1684 = vst [vmem:[%s2735_s26 + $0x20] sm:$0xff] %v1636_v33  ;;  %v1637_v49 = vadd.f32 %v1589_v24, %v1478_v34  ;;  %v1480_v53 = vadd.f32 %v1479_v43, %v1327_v59  ;;  %v1329_v63 = vadd.f32 %v1328_v40, %v2605_v7  ;;  %v1481_v51 = vpop.f32.mrf.mxu1  ;;  %v1593_v24 = vld [vmem:[%s2381_s11 + $0x48] sm:$0xff]  ;;  %v1594_v43 = vld [vmem:[%s2381_s11 + $0x50] sm:$0xff] }
 0x1eb   : > { %v1332_v61 = vpop.f32.mrf.mxu0 }
 0x1ec   : > { %1685 = vst [vmem:[%s2735_s26 + $0x28] sm:$0xff] %v1637_v49  ;;  %v1638_v0 = vadd.f32 %v1590_v47, %v1480_v53  ;;  %v1482_v37 = vadd.f32 %v1481_v51, %v1329_v63  ;;  %v1333_v3 = vadd.f32 %v1332_v61, %v2608_v11  ;;  %v1485_v6 = vpop.f32.mrf.mxu1  ;;  %v1595_v63 = vld [vmem:[%s2381_s11 + $0x58] sm:$0xff] }
 0x1ed   : > { %v1334_v10 = vpop.f32.mrf.mxu0 }
 0x1ee   : > { %1686 = vst [vmem:[%s2735_s26 + $0x30] sm:$0xff] %v1638_v0  ;;  %v1639_v18 = vadd.f32 %v1591_v60, %v1482_v37  ;;  %v1486_v55 = vadd.f32 %v1485_v6, %v1333_v3  ;;  %v1335_v7 = vadd.f32 %v1334_v10, %v2611_v15  ;;  %v1487_v38 = vpop.f32.mrf.mxu1  ;;  %v1596_v37 = vld [vmem:[%s2381_s11 + $0x60] sm:$0xff] }
 0x1ef   : > { %v1336_v26 = vpop.f32.mrf.mxu0 }
 0x1f0   : > { %1687 = vst [vmem:[%s2735_s26 + $0x38] sm:$0xff] %v1639_v18  ;;  %v1640_v33 = vadd.f32 %v1592_v13, %v1486_v55  ;;  %v1488_v34 = vadd.f32 %v1487_v38, %v1335_v7  ;;  %v1337_v11 = vadd.f32 %v1336_v26, %v2614_v19  ;;  %v1489_v59 = vpop.f32.mrf.mxu1  ;;  %v1597_v18 = vld [vmem:[%s2381_s11 + $0x68] sm:$0xff]  ;;  %v1598_v26 = vld [vmem:[%s2381_s11 + $0x70] sm:$0xff] }
 0x1f1   : > { %v1338_v47 = vpop.f32.mrf.mxu0 }
 0x1f2   : > { %1688 = vst [vmem:[%s2735_s26 + $0x40] sm:$0xff] %v1640_v33  ;;  %v1641_v40 = vadd.f32 %v1593_v24, %v1488_v34  ;;  %v1490_v49 = vadd.f32 %v1489_v59, %v1337_v11  ;;  %v1339_v15 = vadd.f32 %v1338_v47, %v2617_v23  ;;  %v1491_v53 = vpop.f32.mrf.mxu1 }
 0x1f3   : > { %v1342_v51 = vpop.f32.mrf.mxu0 }
 0x1f4   : > { %1689 = vst [vmem:[%s2735_s26 + $0x48] sm:$0xff] %v1641_v40  ;;  %v1642_v60 = vadd.f32 %v1594_v43, %v1490_v49  ;;  %v1492_v61 = vadd.f32 %v1491_v53, %v1339_v15  ;;  %v1343_v19 = vadd.f32 %v1342_v51, %v2620_v27  ;;  %v1495_v0 = vpop.f32.mrf.mxu1  ;;  %v1599_v43 = vld [vmem:[%s2381_s11 + $0x78] sm:$0xff]  ;;  %v1600_v53 = vld [vmem:[%s2381_s11 + $0x80] sm:$0xff] }
 0x1f5   : > { %v1344_v3 = vpop.f32.mrf.mxu0 }
 0x1f6   : > { %1690 = vst [vmem:[%s2735_s26 + $0x50] sm:$0xff] %v1642_v60  ;;  %v1643_v6 = vadd.f32 %v1595_v63, %v1492_v61  ;;  %v1496_v13 = vadd.f32 %v1495_v0, %v1343_v19  ;;  %v1345_v23 = vadd.f32 %v1344_v3, %v2623_v31  ;;  %v1497_v10 = vpop.f32.mrf.mxu1  ;;  %v1601_v19 = vld [vmem:[%s2381_s11 + $0x88] sm:$0xff] }
 0x1f7   : > { %v1346_v55 = vpop.f32.mrf.mxu0 }
 0x1f8   : > { %1691 = vst [vmem:[%s2735_s26 + $0x58] sm:$0xff] %v1643_v6  ;;  %v1644_v7 = vadd.f32 %v1596_v37, %v1496_v13  ;;  %v1498_v38 = vadd.f32 %v1497_v10, %v1345_v23  ;;  %v1347_v27 = vadd.f32 %v1346_v55, %v2626_v35  ;;  %v1499_v24 = vpop.f32.mrf.mxu1  ;;  %v1602_v13 = vld [vmem:[%s2381_s11 + $0x90] sm:$0xff] }
 0x1f9   : > { %v1348_v33 = vpop.f32.mrf.mxu0 }
 0x1fa   : > { %1692 = vst [vmem:[%s2735_s26 + $0x60] sm:$0xff] %v1644_v7  ;;  %v1645_v34 = vadd.f32 %v1597_v18, %v1498_v38  ;;  %v1500_v11 = vadd.f32 %v1499_v24, %v1347_v27  ;;  %v1349_v31 = vadd.f32 %v1348_v33, %v2629_v41  ;;  %v1501_v59 = vpop.f32.mrf.mxu1  ;;  %v1603_v7 = vld [vmem:[%s2381_s11 + $0x98] sm:$0xff]  ;;  %v1604_v33 = vld [vmem:[%s2381_s11 + $0xa0] sm:$0xff] }
 0x1fb   : > { %v1352_v47 = vpop.f32.mrf.mxu0 }
 0x1fc   : > { %1693 = vst [vmem:[%s2735_s26 + $0x68] sm:$0xff] %v1645_v34  ;;  %v1646_v40 = vadd.f32 %v1598_v26, %v1500_v11  ;;  %v1502_v49 = vadd.f32 %v1501_v59, %v1349_v31  ;;  %v1353_v35 = vadd.f32 %v1352_v47, %v2632_v46  ;;  %v1505_v15 = vpop.f32.mrf.mxu1 }
 0x1fd   : > { %v1354_v63 = vpop.f32.mrf.mxu0 }
 0x1fe   : > { %1694 = vst [vmem:[%s2735_s26 + $0x70] sm:$0xff] %v1646_v40  ;;  %v1647_v51 = vadd.f32 %v1599_v43, %v1502_v49  ;;  %v1506_v60 = vadd.f32 %v1505_v15, %v1353_v35  ;;  %v1355_v41 = vadd.f32 %v1354_v63, %v2635_v52  ;;  %v1507_v61 = vpop.f32.mrf.mxu1  ;;  %v1605_v43 = vld [vmem:[%s2381_s11 + $0xa8] sm:$0xff]  ;;  %v1606_v15 = vld [vmem:[%s2381_s11 + $0xb0] sm:$0xff] }
 0x1ff   : > { %v1356_v0 = vpop.f32.mrf.mxu0 }
 0x200   : > { %1695 = vst [vmem:[%s2735_s26 + $0x78] sm:$0xff] %v1647_v51  ;;  %v1648_v37 = vadd.f32 %v1600_v53, %v1506_v60  ;;  %v1508_v3 = vadd.f32 %v1507_v61, %v1355_v41  ;;  %v1357_v46 = vadd.f32 %v1356_v0, %v2638_v57  ;;  %v1509_v6 = vpop.f32.mrf.mxu1  ;;  %v1607_v41 = vld [vmem:[%s2381_s11 + $0xb8] sm:$0xff] }
 0x201   : > { %v1358_v23 = vpop.f32.mrf.mxu0 }
 0x202   : > { %1696 = vst [vmem:[%s2735_s26 + $0x80] sm:$0xff] %v1648_v37  ;;  %v1649_v10 = vadd.f32 %v1601_v19, %v1508_v3  ;;  %v1510_v18 = vadd.f32 %v1509_v6, %v1357_v46  ;;  %v1359_v52 = vadd.f32 %v1358_v23, %v2641_v62  ;;  %v1511_v55 = vpop.f32.mrf.mxu1  ;;  %v1608_v3 = vld [vmem:[%s2381_s11 + $0xc0] sm:$0xff] }
 0x203   : > { %v1362_v38 = vpop.f32.mrf.mxu0 }
 0x204   : > { %1697 = vst [vmem:[%s2735_s26 + $0x88] sm:$0xff] %v1649_v10  ;;  %v1650_v27 = vadd.f32 %v1602_v13, %v1510_v18  ;;  %v1512_v24 = vadd.f32 %v1511_v55, %v1359_v52  ;;  %v1363_v57 = vadd.f32 %v1362_v38, %v2644_v4  ;;  %v1515_v26 = vpop.f32.mrf.mxu1  ;;  %v1609_v10 = vld [vmem:[%s2381_s11 + $0xc8] sm:$0xff]  ;;  %v1610_v38 = vld [vmem:[%s2381_s11 + $0xd0] sm:$0xff] }
 0x205   : > { %v1364_v34 = vpop.f32.mrf.mxu0 }
 0x206   : > { %1698 = vst [vmem:[%s2735_s26 + $0x90] sm:$0xff] %v1650_v27  ;;  %v1651_v11 = vadd.f32 %v1603_v7, %v1512_v24  ;;  %v1516_v31 = vadd.f32 %v1515_v26, %v1363_v57  ;;  %v1365_v62 = vadd.f32 %v1364_v34, %v2647_v9  ;;  %v1517_v59 = vpop.f32.mrf.mxu1 }
 0x207   : > { %v1366_v47 = vpop.f32.mrf.mxu0 }
 0x208   : > { %1699 = vst [vmem:[%s2735_s26 + $0x98] sm:$0xff] %v1651_v11  ;;  %v1652_v40 = vadd.f32 %v1604_v33, %v1516_v31  ;;  %v1518_v49 = vadd.f32 %v1517_v59, %v1365_v62  ;;  %v1367_v4 = vadd.f32 %v1366_v47, %v2650_v14  ;;  %v1519_v35 = vpop.f32.mrf.mxu1  ;;  %v1611_v33 = vld [vmem:[%s2381_s11 + $0xd8] sm:$0xff]  ;;  %v1612_v59 = vld [vmem:[%s2381_s11 + $0xe0] sm:$0xff] }
 0x209   : > { %v1368_v53 = vpop.f32.mrf.mxu0 }
 0x20a   : > { %1700 = vst [vmem:[%s2735_s26 + $0xa0] sm:$0xff] %v1652_v40  ;;  %v1653_v63 = vadd.f32 %v1605_v43, %v1518_v49  ;;  %v1520_v51 = vadd.f32 %v1519_v35, %v1367_v4  ;;  %v1369_v9 = vadd.f32 %v1368_v53, %v2653_v20  ;;  %v1521_v60 = vpop.f32.mrf.mxu1  ;;  %v1613_v4 = vld [vmem:[%s2381_s11 + $0xe8] sm:$0xff] }
 0x20b   : > { %v1372_v61 = vpop.f32.mrf.mxu0 }
 0x20c   : > { %1701 = vst [vmem:[%s2735_s26 + $0xa8] sm:$0xff] %v1653_v63  ;;  %v1654_v19 = vadd.f32 %v1606_v15, %v1520_v51  ;;  %v1522_v0 = vadd.f32 %v1521_v60, %v1369_v9  ;;  %v1373_v14 = vadd.f32 %v1372_v61, %v2656_v25  ;;  %v1525_v37 = vpop.f32.mrf.mxu1  ;;  %v1614_v51 = vld [vmem:[%s2381_s11 + $0xf0] sm:$0xff] }
 0x20d   : > { %v1374_v46 = vpop.f32.mrf.mxu0 }
 0x20e   : > { %1702 = vst [vmem:[%s2735_s26 + $0xb0] sm:$0xff] %v1654_v19  ;;  %v1655_v6 = vadd.f32 %v1607_v41, %v1522_v0  ;;  %v1526_v13 = vadd.f32 %v1525_v37, %v1373_v14  ;;  %v1375_v20 = vadd.f32 %v1374_v46, %v2659_v30  ;;  %v1527_v23 = vpop.f32.mrf.mxu1  ;;  %v1615_v19 = vld [vmem:[%s2381_s11 + $0xf8] sm:$0xff]  ;;  %v1616_v46 = vld [vmem:[%s2381_s11 + $0x100] sm:$0xff] }
 0x20f   : > { %v1376_v18 = vpop.f32.mrf.mxu0 }
 0x210   : > { %1703 = vst [vmem:[%s2735_s26 + $0xb8] sm:$0xff] %v1655_v6  ;;  %v1656_v52 = vadd.f32 %v1608_v3, %v1526_v13  ;;  %v1528_v55 = vadd.f32 %v1527_v23, %v1375_v20  ;;  %v1377_v25 = vadd.f32 %v1376_v18, %v2662_v36  ;;  %v1529_v7 = vpop.f32.mrf.mxu1 }
 0x211   : > { %v1378_v27 = vpop.f32.mrf.mxu0 }
 0x212   : > { %1704 = vst [vmem:[%s2735_s26 + $0xc0] sm:$0xff] %v1656_v52  ;;  %v1657_v24 = vadd.f32 %v1609_v10, %v1528_v55  ;;  %v1530_v57 = vadd.f32 %v1529_v7, %v1377_v25  ;;  %v1379_v30 = vadd.f32 %v1378_v27, %v2665_v44  ;;  %v1531_v26 = vpop.f32.mrf.mxu1  ;;  %v1617_v10 = vld [vmem:[%s2381_s11 + $0x108] sm:$0xff]  ;;  %v1618_v7 = vld [vmem:[%s2381_s11 + $0x110] sm:$0xff] }
 0x213   : > { %v1382_v34 = vpop.f32.mrf.mxu0 }
 0x214   : > { %1705 = vst [vmem:[%s2735_s26 + $0xc8] sm:$0xff] %v1657_v24  ;;  %v1658_v11 = vadd.f32 %v1610_v38, %v1530_v57  ;;  %v1532_v31 = vadd.f32 %v1531_v26, %v1379_v30  ;;  %v1383_v36 = vadd.f32 %v1382_v34, %v2668_v50  ;;  %v1535_v62 = vpop.f32.mrf.mxu1  ;;  %v1619_v30 = vld [vmem:[%s2381_s11 + $0x118] sm:$0xff] }
 0x215   : > { %v1384_v43 = vpop.f32.mrf.mxu0 }
 0x216   : > { %1706 = vst [vmem:[%s2735_s26 + $0xd0] sm:$0xff] %v1658_v11  ;;  %v1659_v47 = vadd.f32 %v1611_v33, %v1532_v31  ;;  %v1536_v40 = vadd.f32 %v1535_v62, %v1383_v36  ;;  %v1385_v44 = vadd.f32 %v1384_v43, %v2671_v58  ;;  %v1537_v49 = vpop.f32.mrf.mxu1  ;;  %v1620_v31 = vld [vmem:[%s2381_s11 + $0x120] sm:$0xff] }
 0x217   : > { %v1386_v35 = vpop.f32.mrf.mxu0 }
 0x218   : > { %1707 = vst [vmem:[%s2735_s26 + $0xd8] sm:$0xff] %v1659_v47  ;;  %v1660_v15 = vadd.f32 %v1612_v59, %v1536_v40  ;;  %v1538_v53 = vadd.f32 %v1537_v49, %v1385_v44  ;;  %v1387_v50 = vadd.f32 %v1386_v35, %v2674_v1  ;;  %v1539_v63 = vpop.f32.mrf.mxu1  ;;  %v1621_v47 = vld [vmem:[%s2381_s11 + $0x128] sm:$0xff]  ;;  %v1622_v35 = vld [vmem:[%s2381_s11 + $0x130] sm:$0xff] }
 0x219   : > { %v1388_v9 = vpop.f32.mrf.mxu0 }
 0x21a   : > { %1708 = vst [vmem:[%s2735_s26 + $0xe0] sm:$0xff] %v1660_v15  ;;  %v1661_v60 = vadd.f32 %v1613_v4, %v1538_v53  ;;  %v1540_v41 = vadd.f32 %v1539_v63, %v1387_v50  ;;  %v1389_v58 = vadd.f32 %v1388_v9, %v2677_v8  ;;  %v1541_v61 = vpop.f32.mrf.mxu1 }
 0x21b   : > { %v1392_v0 = vpop.f32.mrf.mxu0 }
 0x21c   : > { %1709 = vst [vmem:[%s2735_s26 + $0xe8] sm:$0xff] %v1661_v60  ;;  %v1662_v14 = vadd.f32 %v1614_v51, %v1540_v41  ;;  %v1542_v37 = vadd.f32 %v1541_v61, %v1389_v58  ;;  %v1393_v1 = vadd.f32 %v1392_v0, %v2680_v16  ;;  %v1545_v3 = vpop.f32.mrf.mxu1  ;;  %v1623_v51 = vld [vmem:[%s2381_s11 + $0x138] sm:$0xff]  ;;  %v1624_v61 = vld [vmem:[%s2381_s11 + $0x140] sm:$0xff] }
 0x21d   : > { %v1394_v6 = vpop.f32.mrf.mxu0 }
 0x21e   : > { %1710 = vst [vmem:[%s2735_s26 + $0xf0] sm:$0xff] %v1662_v14  ;;  %v1663_v13 = vadd.f32 %v1615_v19, %v1542_v37  ;;  %v1546_v20 = vadd.f32 %v1545_v3, %v1393_v1  ;;  %v1395_v8 = vadd.f32 %v1394_v6, %v2683_v22  ;;  %v1547_v23 = vpop.f32.mrf.mxu1  ;;  %v1625_v1 = vld [vmem:[%s2381_s11 + $0x148] sm:$0xff] }
 0x21f   : > { %v1396_v18 = vpop.f32.mrf.mxu0 }
 0x220   : > { %1711 = vst [vmem:[%s2735_s26 + $0xf8] sm:$0xff] %v1663_v13  ;;  %v1664_v52 = vadd.f32 %v1616_v46, %v1546_v20  ;;  %v1548_v55 = vadd.f32 %v1547_v23, %v1395_v8  ;;  %v1397_v16 = vadd.f32 %v1396_v18, %v2686_v29  ;;  %v1549_v25 = vpop.f32.mrf.mxu1  ;;  %v1626_v20 = vld [vmem:[%s2381_s11 + $0x150] sm:$0xff] }
 0x221   : > { %v1398_v38 = vpop.f32.mrf.mxu0 }
 0x222   : > { %1712 = vst [vmem:[%s2735_s26 + $0x100] sm:$0xff] %v1664_v52  ;;  %v1665_v27 = vadd.f32 %v1617_v10, %v1548_v55  ;;  %v1550_v24 = vadd.f32 %v1549_v25, %v1397_v16  ;;  %v1399_v22 = vadd.f32 %v1398_v38, %v2689_v39  ;;  %v1551_v57 = vpop.f32.mrf.mxu1  ;;  %v1627_v52 = vld [vmem:[%s2381_s11 + $0x158] sm:$0xff]  ;;  %v1628_v38 = vld [vmem:[%s2381_s11 + $0x160] sm:$0xff] }
 0x223   : > { %v1402_v26 = vpop.f32.mrf.mxu0 }
 0x224   : > { %1713 = vst [vmem:[%s2735_s26 + $0x108] sm:$0xff] %v1665_v27  ;;  %v1666_v33 = vadd.f32 %v1618_v7, %v1550_v24  ;;  %v1552_v34 = vadd.f32 %v1551_v57, %v1399_v22  ;;  %v1403_v29 = vadd.f32 %v1402_v26, %v2692_v48  ;;  %v1555_v11 = vpop.f32.mrf.mxu1 }
 0x225   : > { %v1404_v36 = vpop.f32.mrf.mxu0 }
 0x226   : > { %1714 = vst [vmem:[%s2735_s26 + $0x110] sm:$0xff] %v1666_v33  ;;  %v1667_v62 = vadd.f32 %v1619_v30, %v1552_v34  ;;  %v1556_v59 = vadd.f32 %v1555_v11, %v1403_v29  ;;  %v1405_v39 = vadd.f32 %v1404_v36, %v2695_v56  ;;  %v1557_v43 = vpop.f32.mrf.mxu1  ;;  %v1629_v30 = vld [vmem:[%s2381_s11 + $0x168] sm:$0xff]  ;;  %v1630_v11 = vld [vmem:[%s2381_s11 + $0x170] sm:$0xff] }
 0x227   : > { %v1406_v40 = vpop.f32.mrf.mxu0 }
 0x228   : > { %1715 = vst [vmem:[%s2735_s26 + $0x118] sm:$0xff] %v1667_v62  ;;  %v1668_v44 = vadd.f32 %v1620_v31, %v1556_v59  ;;  %v1558_v49 = vadd.f32 %v1557_v43, %v1405_v39  ;;  %v1407_v48 = vadd.f32 %v1406_v40, %v2698_v2  ;;  %v1559_v4 = vpop.f32.mrf.mxu1  ;;  %v1631_v39 = vld [vmem:[%s2381_s11 + $0x178] sm:$0xff] }
 0x229   : > { %v1408_v15 = vpop.f32.mrf.mxu0 }
 0x22a   : > { %1716 = vst [vmem:[%s2735_s26 + $0x120] sm:$0xff] %v1668_v44  ;;  %v1669_v53 = vadd.f32 %v1621_v47, %v1558_v49  ;;  %v1560_v50 = vadd.f32 %v1559_v4, %v1407_v48  ;;  %v1409_v56 = vadd.f32 %v1408_v15, %v2701_v12  ;;  %v1561_v63 = vpop.f32.mrf.mxu1 }
 0x22b   : > { %v1412_v9 = vpop.f32.mrf.mxu0 }
 0x22c   : > { %1717 = vst [vmem:[%s2735_s26 + $0x128] sm:$0xff] %v1669_v53  ;;  %v1670_v60 = vadd.f32 %v1622_v35, %v1560_v50  ;;  %v1562_v41 = vadd.f32 %v1561_v63, %v1409_v56  ;;  %v1413_v2 = vadd.f32 %v1412_v9, %v2704_v21  ;;  %v1565_v58 = vpop.f32.mrf.mxu1 }
 0x22d   : > { %v1414_v19 = vpop.f32.mrf.mxu0 }
 0x22e   : > { %1718 = vst [vmem:[%s2735_s26 + $0x130] sm:$0xff] %v1670_v60  ;;  %v1671_v0 = vadd.f32 %v1623_v51, %v1562_v41  ;;  %v1566_v14 = vadd.f32 %v1565_v58, %v1413_v2  ;;  %v1415_v12 = vadd.f32 %v1414_v19, %v2707_v32  ;;  %v1567_v37 = vpop.f32.mrf.mxu1 }
 0x22f   : > { %v1416_v3 = vpop.f32.mrf.mxu0 }
 0x230   : > { %1719 = vst [vmem:[%s2735_s26 + $0x138] sm:$0xff] %v1671_v0  ;;  %v1672_v46 = vadd.f32 %v1624_v61, %v1566_v14  ;;  %v1568_v6 = vadd.f32 %v1567_v37, %v1415_v12  ;;  %v1417_v21 = vadd.f32 %v1416_v3, %v2710_v42  ;;  %v1569_v13 = vpop.f32.mrf.mxu1 }
 0x231   : > { %v1418_v8 = vpop.f32.mrf.mxu0 }
 0x232   : > { %1720 = vst [vmem:[%s2735_s26 + $0x140] sm:$0xff] %v1672_v46  ;;  %v1673_v23 = vadd.f32 %v1625_v1, %v1568_v6  ;;  %v1570_v10 = vadd.f32 %v1569_v13, %v1417_v21  ;;  %v1419_v32 = vadd.f32 %v1418_v8, %v2713_v54  ;;  %v1571_v18 = vpop.f32.mrf.mxu1 }
 0x233   : > { %v1422_v55 = vpop.f32.mrf.mxu0 }
 0x234   : > { %1721 = vst [vmem:[%s2735_s26 + $0x148] sm:$0xff] %v1673_v23  ;;  %v1674_v16 = vadd.f32 %v1626_v20, %v1570_v10  ;;  %v1572_v25 = vadd.f32 %v1571_v18, %v1419_v32  ;;  %v1423_v42 = vadd.f32 %v1422_v55, %v2716_v5  ;;  %v1575_v7 = vpop.f32.mrf.mxu1 }
 0x235   : > { %v1424_v27 = vpop.f32.mrf.mxu0 }
 0x236   : > { %1722 = vst [vmem:[%s2735_s26 + $0x150] sm:$0xff] %v1674_v16  ;;  %v1675_v24 = vadd.f32 %v1627_v52, %v1572_v25  ;;  %v1576_v22 = vadd.f32 %v1575_v7, %v1423_v42  ;;  %v1425_v54 = vadd.f32 %v1424_v27, %v2719_v17  ;;  %v1577_v57 = vpop.f32.mrf.mxu1 }
 0x237   : > { %v1426_v26 = vpop.f32.mrf.mxu0 }
 0x238   : > { %1723 = vst [vmem:[%s2735_s26 + $0x158] sm:$0xff] %v1675_v24  ;;  %v1676_v33 = vadd.f32 %v1628_v38, %v1576_v22  ;;  %v1578_v5 = vadd.f32 %v1577_v57, %v1425_v54  ;;  %v1427_v34 = vadd.f32 %v1426_v26, %v2722_v28  ;;  %v1579_v29 = vpop.f32.mrf.mxu1 }
 0x239   : > { %v1428_v31 = vpop.f32.mrf.mxu0 }
 0x23a   : > { %1724 = vst [vmem:[%s2735_s26 + $0x160] sm:$0xff] %v1676_v33  ;;  %v1677_v17 = vadd.f32 %v1629_v30, %v1578_v5  ;;  %v1580_v36 = vadd.f32 %v1579_v29, %v1427_v34  ;;  %v1429_v62 = vadd.f32 %v1428_v31, %v2725_v45  ;;  %v1581_v59 = vpop.f32.mrf.mxu1 }
 0x23c   : > { %1725 = vst [vmem:[%s2735_s26 + $0x168] sm:$0xff] %v1677_v17  ;;  %v1678_v43 = vadd.f32 %v1630_v11, %v1580_v36  ;;  %v1582_v47 = vadd.f32 %v1581_v59, %v1429_v62 }
 0x23e   : > { %1726 = vst [vmem:[%s2735_s26 + $0x170] sm:$0xff] %v1678_v43  ;;  %v1679_v28 = vadd.f32 %v1631_v39, %v1582_v47 }
 0x240   : > { %1727 = vst [vmem:[%s2735_s26 + $0x178] sm:$0xff] %v1679_v28 }
 0x241   : > { %2086 = shalt.err (!%p2083_p4)
}
 0x242   : > { %s2087_s30 = scalar_lea.hbm %s2878_s14, 6144  ;;  %s2091_s25 = scalar_lea.hbm %s2929_s4, 12288 }
 0x243   : > { %p2088_p6 = scmp.ne.s32.totalorder %s2878_s14, %s2087_s30  ;;  %p2092_p2 = scmp.lt.s32.totalorder %s2878_s14, %s2929_s4 }
 0x244   : > { %p2093_p7 = scmp.lt.s32.totalorder %s2091_s25, %s2087_s30 }
 0x245   : > { %p2089_p0 = pnand %p2088_p6, %p2949_p8 }
 0x246   : > { %p2094_p13 = por %p2093_p7, %p2092_p2 }
 0x247   : > { %p2090_p12 = pneg %p2089_p0 }
 0x249   : > { %p2095_p11 = pnand %p2094_p13, %p2090_p12 }
 0x24b   : > { %2098 = shalt.err (!%p2095_p11)
}
 0x24c   : > { %s2156_s11 = smov 256   ;;  %s2157_s26 = smov 16  }
 0x24d   : > { %1899 = dma.vmem_to_hbm [thread:$0]  (%p2949_p8), %s2880_s22, 6144, %s2878_s14, %s1729_s19, %s2156_s11, %s2156_s11, %s2157_s26  }
 0x24e PF: > { %s1758_s7 = sand.u32 1, %s2133_s15   ;;  %p2950_p9 = scmp.ne.s32.totalorder %s2939_s28, 0 }
 0x24f   : > { %p2951_p10 = scmp.ge.s32.totalorder %s2145_s18, 2  ;;  %s1759_s20 = scalar_lea.sflag [#allocation4], %s1758_s7 }
 0x251   : > { %p1916_p1 = pnand %p2951_p10, %p2950_p9 }
 0x253   : > { %p1917_p5 = pneg %p1916_p1 }
 0x255   : > { %2128 = dma.done.wait (%p1917_p5), %s1759_s20, 6144  }
 0x256   : > { %2130 = vsyncadd (%p1917_p5), %s1759_s20, 4294961152  ;;  %p21_p3 = scmp.ge.s32.totalorder %s2208_s21, 4   ;;  %s2952_s15 = smov %s2137_s16 }
 0x257   : > { %s2953_s16 = smov %s2141_s17  ;;  %s2954_s17 = smov %s2220_s24 }
 0x258   : > { %s2955_s18 = smov %s2208_s21  ;;  %23 = sbr.rel (!%p21_p3) target bundleno = 10 (0xa), region = 102 }
 0x25d   :  { %1764 = vsyncpa [#allocation3], 1 }
 0x25e   :  { %1766 = vsyncpa [#allocation3 + $0x1], 1 }
 0x25f   :  { %1767 = vsyncpa [#allocation6], 1 }
 0x260   :  { %1768 = vsyncpa [#allocation9], 1 }
 0x261   :  { %1770 = vsyncpa [#allocation9 + $0x1], 1 }
 0x262   :  { %1771 = vsyncpa [#allocation4], 1 }
 0x263   :  { %1773 = vsyncpa [#allocation4 + $0x1], 1 }

</bundles_post_ra>
